<compile_context>
chip_gen: v5e
topology: v5e:2x2
jax: 0.10.0
libtpu: 0.0.40
codegen_flags: <defaults>
</compile_context>

<pallas_src>
import jax
import jax.numpy as jnp
from jax import lax
from jax.experimental import pallas as pl
from jax.experimental.pallas import tpu as pltpu


HIDDEN = 128
INPUT_SIZE = 1
OUTPUT_SIZE = 1


def lstm_kernel(x_ref, wih_ref, whh_ref, b_ref, wlin_ref, blin_ref, out_ref,
                gxs_ref):
    """Full LSTM recurrence + Linear head in one kernel invocation.

    x_ref    : (S, 1)   VMEM f32   input sequence
    wih_ref  : (1, 4H)  VMEM f32   W_ih (input_size=1) stored as a row
    whh_ref  : (H, 4H)  VMEM bf16  W_hh^T (recurrent-matmul RHS, bf16 operands)
    b_ref    : (1, 4H)  VMEM f32   b_ih + b_hh
    wlin_ref : (1, H)   VMEM f32   Linear weight (row)
    blin_ref : (1,)     SMEM f32   Linear bias (scalar)
    out_ref  : (1, 1)   VMEM f32   prediction for the LAST timestep
    gxs_ref  : (S, 4H)  VMEM f32   scratch: precomputed input projections
    """
    H = HIDDEN
    S = x_ref.shape[0]

    # Input projection for every timestep in ONE VPU op (off the h-chain):
    # gxs[t] = x_t * W_ih_row + (b_ih + b_hh)
    gxs_ref[...] = x_ref[...] * wih_ref[...] + b_ref[...]

    h0 = jnp.zeros((1, H), jnp.float32)
    c0 = jnp.zeros((1, H), jnp.float32)

    def step(t, carry):
        h, c = carry                                    # each (1, H) f32
        gx = gxs_ref[pl.ds(t, 1), :]                    # (1, 4H) f32

        # Cast only at the matmul boundary; MXU accumulates in f32.
        hb = h.astype(jnp.bfloat16)

        def gate_dot(g):
            # Aligned (128, 128) bf16 slice of W_hh^T, fed straight from VMEM.
            return jnp.dot(hb, whh_ref[:, g * H:(g + 1) * H],
                           preferred_element_type=jnp.float32)

        z_i = gx[:, 0 * H:1 * H] + gate_dot(0)
        z_f = gx[:, 1 * H:2 * H] + gate_dot(1)
        z_g = gx[:, 2 * H:3 * H] + gate_dot(2)
        z_o = gx[:, 3 * H:4 * H] + gate_dot(3)

        # sigmoid(z) = 0.5 * tanh(0.5 * z) + 0.5  (EUP tanh).  Per-gate so each
        # activation starts as soon as its own dot pops from the MXU.
        i_g = 0.5 * jnp.tanh(0.5 * z_i) + 0.5
        f_g = 0.5 * jnp.tanh(0.5 * z_f) + 0.5
        g_g = jnp.tanh(z_g)
        o_g = 0.5 * jnp.tanh(0.5 * z_o) + 0.5

        c_new = f_g * c + i_g * g_g
        h_new = o_g * jnp.tanh(c_new)
        return (h_new, c_new)

    # Fully unrolled recurrence: gives the scheduler visibility to overlap the
    # next step's VPU/EUP work with the current step's MXU latency.
    h_last, _ = lax.fori_loop(0, S, step, (h0, c0), unroll=True)

    # Linear head: elementwise mul + lane reduce (XLU) instead of a degenerate
    # N=1 MXU matmul; bias is a scalar SMEM read.
    pred = jnp.sum(h_last * wlin_ref[...], axis=-1, keepdims=True) + blin_ref[0]
    out_ref[...] = pred


def _lstm_pallas(x, wih_row, whh_t_bf16, b, wlin_row, blin):
    S = x.shape[0]
    return pl.pallas_call(
        lstm_kernel,
        out_shape=jax.ShapeDtypeStruct((1, OUTPUT_SIZE), jnp.float32),
        in_specs=[
            pl.BlockSpec(memory_space=pltpu.MemorySpace.VMEM),   # x (S, 1)
            pl.BlockSpec(memory_space=pltpu.MemorySpace.VMEM),   # W_ih row
            pl.BlockSpec(memory_space=pltpu.MemorySpace.VMEM),   # W_hh^T (bf16)
            pl.BlockSpec(memory_space=pltpu.MemorySpace.VMEM),   # fused bias
            pl.BlockSpec(memory_space=pltpu.MemorySpace.VMEM),   # Linear W row
            pl.BlockSpec(memory_space=pltpu.MemorySpace.SMEM),   # Linear bias
        ],
        out_specs=pl.BlockSpec(memory_space=pltpu.MemorySpace.VMEM),
        scratch_shapes=[pltpu.VMEM((S, 4 * HIDDEN), jnp.float32)],
    )(x, wih_row, whh_t_bf16, b, wlin_row, blin)


def prepare_params(params):
    """One-time param prep (transposes / bias fusion / bf16 cast), hoisted out
    of the per-call path."""
    w_ih, w_hh, b_ih, b_hh, w_lin, b_lin = params
    wih_row = jnp.asarray(w_ih, jnp.float32).reshape(1, 4 * HIDDEN)       # (4H,1) -> (1,4H)
    whh_t_bf16 = jnp.transpose(jnp.asarray(w_hh, jnp.float32)).astype(jnp.bfloat16)  # (H,4H) bf16
    b = (b_ih + b_hh).astype(jnp.float32).reshape(1, 4 * HIDDEN)
    wlin_row = jnp.asarray(w_lin, jnp.float32).reshape(1, HIDDEN)         # (1, H)
    blin = jnp.asarray(b_lin, jnp.float32).reshape(1)
    return (wih_row, whh_t_bf16, b, wlin_row, blin)


@jax.jit
def lstm_forward(input_seq, prepped):
    """Equivalent of LSTM.forward(input_seq) with zero initial hidden/cell state.

    input_seq : (S,) float32
    returns   : (1,) float32  -- predictions[-1]
    """
    wih_row, whh_t_bf16, b, wlin_row, blin = prepped
    x = input_seq.astype(jnp.float32).reshape(-1, 1)
    out = _lstm_pallas(x, wih_row, whh_t_bf16, b, wlin_row, blin)
    return out[0]


def init_params(key):
    """Deterministic init, PyTorch-style uniform(-1/sqrt(H), 1/sqrt(H))."""
    k = 1.0 / jnp.sqrt(jnp.float32(HIDDEN))
    ks = jax.random.split(key, 6)
    w_ih = jax.random.uniform(ks[0], (4 * HIDDEN, INPUT_SIZE), jnp.float32, -k, k)
    w_hh = jax.random.uniform(ks[1], (4 * HIDDEN, HIDDEN), jnp.float32, -k, k)
    b_ih = jax.random.uniform(ks[2], (4 * HIDDEN,), jnp.float32, -k, k)
    b_hh = jax.random.uniform(ks[3], (4 * HIDDEN,), jnp.float32, -k, k)
    w_lin = jax.random.uniform(ks[4], (OUTPUT_SIZE, HIDDEN), jnp.float32, -k, k)
    b_lin = jax.random.uniform(ks[5], (OUTPUT_SIZE,), jnp.float32, -k, k)
    return (w_ih, w_hh, b_ih, b_hh, w_lin, b_lin)


def reference_forward(input_seq, params):
    """Pure-JAX f32 reference of the PyTorch forward (for correctness check)."""
    w_ih, w_hh, b_ih, b_hh, w_lin, b_lin = params
    H = HIDDEN
    x = input_seq.reshape(-1, 1).astype(jnp.float32)
    h = jnp.zeros((H,), jnp.float32)
    c = jnp.zeros((H,), jnp.float32)

    def step(carry, x_t):
        h, c = carry
        z = w_ih @ x_t + b_ih + w_hh @ h + b_hh
        i = jax.nn.sigmoid(z[0 * H:1 * H])
        f = jax.nn.sigmoid(z[1 * H:2 * H])
        g = jnp.tanh(z[2 * H:3 * H])
        o = jax.nn.sigmoid(z[3 * H:4 * H])
        c = f * c + i * g
        h = o * jnp.tanh(c)
        return (h, c), h

    (_, _), hs = lax.scan(step, (h, c), x)
    preds = hs @ w_lin.T + b_lin  # (S, 1)
    return preds[-1]


if __name__ == "__main__":
    key = jax.random.PRNGKey(0)
    k_param, k_x = jax.random.split(key)

    params = init_params(k_param)
    seq_len = 8
    input_seq = jax.random.normal(k_x, (seq_len,), jnp.float32)

    prepped = prepare_params(params)
    out = lstm_forward(input_seq, prepped)
    out = jax.block_until_ready(out)

    ref = reference_forward(input_seq, params)
    assert out.shape == (1,)
    # bf16 matmul operands (f32 accumulate) -> relaxed tolerance vs f32 reference.
    assert jnp.allclose(out, ref, atol=2e-2, rtol=2e-2), (out, ref)

    print("KERNEL_OK")
</pallas_src>

<mosaic_0001>
module attributes {stable_mosaic.version = 11 : i64} {
  func.func @lstm_kernel(%arg0: memref<8x1xf32, #tpu.memory_space<vmem>>, %arg1: memref<1x512xf32, #tpu.memory_space<vmem>>, %arg2: memref<128x512xbf16, #tpu.memory_space<vmem>>, %arg3: memref<1x512xf32, #tpu.memory_space<vmem>>, %arg4: memref<1x128xf32, #tpu.memory_space<vmem>>, %arg5: memref<1xf32, #tpu.memory_space<smem>>, %arg6: memref<1x1xf32, #tpu.memory_space<vmem>>, %arg7: memref<8x512xf32, #tpu.memory_space<vmem>>) attributes {dimension_semantics = [], scalar_prefetch = 0 : i64, scratch_operands = 1 : i64, tpu.core_type = #tpu.core_type<tc>} {
    %c0 = arith.constant 0 : index
    %c0_0 = arith.constant 0 : index
    %0 = vector.load %arg0[%c0, %c0_0] : memref<8x1xf32, #tpu.memory_space<vmem>>, vector<8x1xf32>
    %c0_1 = arith.constant 0 : index
    %c0_2 = arith.constant 0 : index
    %1 = vector.load %arg1[%c0_1, %c0_2] : memref<1x512xf32, #tpu.memory_space<vmem>>, vector<1x512xf32>
    %2 = vector.broadcast %0 : vector<8x1xf32> to vector<8x512xf32>
    %3 = vector.broadcast %1 : vector<1x512xf32> to vector<8x512xf32>
    %4 = arith.mulf %2, %3 : vector<8x512xf32>
    %c0_3 = arith.constant 0 : index
    %c0_4 = arith.constant 0 : index
    %5 = vector.load %arg3[%c0_3, %c0_4] : memref<1x512xf32, #tpu.memory_space<vmem>>, vector<1x512xf32>
    %6 = vector.broadcast %5 : vector<1x512xf32> to vector<8x512xf32>
    %7 = arith.addf %4, %6 : vector<8x512xf32>
    %c0_5 = arith.constant 0 : index
    %c0_6 = arith.constant 0 : index
    %8 = vector.load %arg7[%c0_5, %c0_6] : memref<8x512xf32, #tpu.memory_space<vmem>>, vector<8x512xf32>
    tpu.vector_store %arg7[%c0_5, %c0_6], %7 {strides = array<i32>} : memref<8x512xf32, #tpu.memory_space<vmem>>, vector<8x512xf32>,
    %cst = arith.constant 0.000000e+00 : f32
    %9 = vector.broadcast %cst : f32 to vector<1x128xf32>
    %cst_7 = arith.constant 0.000000e+00 : f32
    %10 = vector.broadcast %cst_7 : f32 to vector<1x128xf32>
    %c0_i32 = arith.constant 0 : i32
    %11 = arith.index_cast %c0_i32 : i32 to index
    %c0_8 = arith.constant 0 : index
    %12 = vector.load %arg7[%11, %c0_8] : memref<8x512xf32, #tpu.memory_space<vmem>>, vector<1x512xf32>
    %13 = arith.truncf %9 : vector<1x128xf32> to vector<1x128xbf16>
    %14 = vector.extract_strided_slice %12 {offsets = [0, 0], sizes = [1, 128], strides = [1, 1]} : vector<1x512xf32> to vector<1x128xf32>
    %c0_9 = arith.constant 0 : index
    %c0_10 = arith.constant 0 : index
    %15 = vector.load %arg2[%c0_9, %c0_10] : memref<128x512xbf16, #tpu.memory_space<vmem>>, vector<128x128xbf16>
    %cst_11 = arith.constant dense<0.000000e+00> : vector<1x128xf32>
    %16 = tpu.matmul %13, %15, %cst_11 {dimension_numbers = #tpu.dot_dimension_numbers<[1], [0], [0], [1], [0, 0, 1, 1], [], []>} : vector<1x128xbf16>, vector<128x128xbf16>, vector<1x128xf32> -> vector<1x128xf32>
    %17 = arith.addf %14, %16 : vector<1x128xf32>
    %18 = vector.extract_strided_slice %12 {offsets = [0, 128], sizes = [1, 128], strides = [1, 1]} : vector<1x512xf32> to vector<1x128xf32>
    %c0_12 = arith.constant 0 : index
    %c128 = arith.constant 128 : index
    %19 = vector.load %arg2[%c0_12, %c128] : memref<128x512xbf16, #tpu.memory_space<vmem>>, vector<128x128xbf16>
    %cst_13 = arith.constant dense<0.000000e+00> : vector<1x128xf32>
    %20 = tpu.matmul %13, %19, %cst_13 {dimension_numbers = #tpu.dot_dimension_numbers<[1], [0], [0], [1], [0, 0, 1, 1], [], []>} : vector<1x128xbf16>, vector<128x128xbf16>, vector<1x128xf32> -> vector<1x128xf32>
    %21 = arith.addf %18, %20 : vector<1x128xf32>
    %22 = vector.extract_strided_slice %12 {offsets = [0, 256], sizes = [1, 128], strides = [1, 1]} : vector<1x512xf32> to vector<1x128xf32>
    %c0_14 = arith.constant 0 : index
    %c256 = arith.constant 256 : index
    %23 = vector.load %arg2[%c0_14, %c256] : memref<128x512xbf16, #tpu.memory_space<vmem>>, vector<128x128xbf16>
    %cst_15 = arith.constant dense<0.000000e+00> : vector<1x128xf32>
    %24 = tpu.matmul %13, %23, %cst_15 {dimension_numbers = #tpu.dot_dimension_numbers<[1], [0], [0], [1], [0, 0, 1, 1], [], []>} : vector<1x128xbf16>, vector<128x128xbf16>, vector<1x128xf32> -> vector<1x128xf32>
    %25 = arith.addf %22, %24 : vector<1x128xf32>
    %26 = vector.extract_strided_slice %12 {offsets = [0, 384], sizes = [1, 128], strides = [1, 1]} : vector<1x512xf32> to vector<1x128xf32>
    %c0_16 = arith.constant 0 : index
    %c384 = arith.constant 384 : index
    %27 = vector.load %arg2[%c0_16, %c384] : memref<128x512xbf16, #tpu.memory_space<vmem>>, vector<128x128xbf16>
    %cst_17 = arith.constant dense<0.000000e+00> : vector<1x128xf32>
    %28 = tpu.matmul %13, %27, %cst_17 {dimension_numbers = #tpu.dot_dimension_numbers<[1], [0], [0], [1], [0, 0, 1, 1], [], []>} : vector<1x128xbf16>, vector<128x128xbf16>, vector<1x128xf32> -> vector<1x128xf32>
    %29 = arith.addf %26, %28 : vector<1x128xf32>
    %cst_18 = arith.constant 5.000000e-01 : f32
    %30 = vector.broadcast %cst_18 : f32 to vector<1x128xf32>
    %31 = arith.mulf %30, %17 : vector<1x128xf32>
    %32 = math.tanh %31 : vector<1x128xf32>
    %cst_19 = arith.constant 5.000000e-01 : f32
    %33 = vector.broadcast %cst_19 : f32 to vector<1x128xf32>
    %34 = arith.mulf %33, %32 : vector<1x128xf32>
    %cst_20 = arith.constant 5.000000e-01 : f32
    %35 = vector.broadcast %cst_20 : f32 to vector<1x128xf32>
    %36 = arith.addf %34, %35 : vector<1x128xf32>
    %cst_21 = arith.constant 5.000000e-01 : f32
    %37 = vector.broadcast %cst_21 : f32 to vector<1x128xf32>
    %38 = arith.mulf %37, %21 : vector<1x128xf32>
    %39 = math.tanh %38 : vector<1x128xf32>
    %cst_22 = arith.constant 5.000000e-01 : f32
    %40 = vector.broadcast %cst_22 : f32 to vector<1x128xf32>
    %41 = arith.mulf %40, %39 : vector<1x128xf32>
    %cst_23 = arith.constant 5.000000e-01 : f32
    %42 = vector.broadcast %cst_23 : f32 to vector<1x128xf32>
    %43 = arith.addf %41, %42 : vector<1x128xf32>
    %44 = math.tanh %25 : vector<1x128xf32>
    %cst_24 = arith.constant 5.000000e-01 : f32
    %45 = vector.broadcast %cst_24 : f32 to vector<1x128xf32>
    %46 = arith.mulf %45, %29 : vector<1x128xf32>
    %47 = math.tanh %46 : vector<1x128xf32>
    %cst_25 = arith.constant 5.000000e-01 : f32
    %48 = vector.broadcast %cst_25 : f32 to vector<1x128xf32>
    %49 = arith.mulf %48, %47 : vector<1x128xf32>
    %cst_26 = arith.constant 5.000000e-01 : f32
    %50 = vector.broadcast %cst_26 : f32 to vector<1x128xf32>
    %51 = arith.addf %49, %50 : vector<1x128xf32>
    %52 = arith.mulf %43, %10 : vector<1x128xf32>
    %53 = arith.mulf %36, %44 : vector<1x128xf32>
    %54 = arith.addf %52, %53 : vector<1x128xf32>
    %55 = math.tanh %54 : vector<1x128xf32>
    %56 = arith.mulf %51, %55 : vector<1x128xf32>
    %c1_i32 = arith.constant 1 : i32
    %57 = arith.index_cast %c1_i32 : i32 to index
    %c0_27 = arith.constant 0 : index
    %58 = vector.load %arg7[%57, %c0_27] : memref<8x512xf32, #tpu.memory_space<vmem>>, vector<1x512xf32>
    %59 = arith.truncf %56 : vector<1x128xf32> to vector<1x128xbf16>
    %60 = vector.extract_strided_slice %58 {offsets = [0, 0], sizes = [1, 128], strides = [1, 1]} : vector<1x512xf32> to vector<1x128xf32>
    %c0_28 = arith.constant 0 : index
    %c0_29 = arith.constant 0 : index
    %61 = vector.load %arg2[%c0_28, %c0_29] : memref<128x512xbf16, #tpu.memory_space<vmem>>, vector<128x128xbf16>
    %cst_30 = arith.constant dense<0.000000e+00> : vector<1x128xf32>
    %62 = tpu.matmul %59, %61, %cst_30 {dimension_numbers = #tpu.dot_dimension_numbers<[1], [0], [0], [1], [0, 0, 1, 1], [], []>} : vector<1x128xbf16>, vector<128x128xbf16>, vector<1x128xf32> -> vector<1x128xf32>
    %63 = arith.addf %60, %62 : vector<1x128xf32>
    %64 = vector.extract_strided_slice %58 {offsets = [0, 128], sizes = [1, 128], strides = [1, 1]} : vector<1x512xf32> to vector<1x128xf32>
    %c0_31 = arith.constant 0 : index
    %c128_32 = arith.constant 128 : index
    %65 = vector.load %arg2[%c0_31, %c128_32] : memref<128x512xbf16, #tpu.memory_space<vmem>>, vector<128x128xbf16>
    %cst_33 = arith.constant dense<0.000000e+00> : vector<1x128xf32>
    %66 = tpu.matmul %59, %65, %cst_33 {dimension_numbers = #tpu.dot_dimension_numbers<[1], [0], [0], [1], [0, 0, 1, 1], [], []>} : vector<1x128xbf16>, vector<128x128xbf16>, vector<1x128xf32> -> vector<1x128xf32>
    %67 = arith.addf %64, %66 : vector<1x128xf32>
    %68 = vector.extract_strided_slice %58 {offsets = [0, 256], sizes = [1, 128], strides = [1, 1]} : vector<1x512xf32> to vector<1x128xf32>
    %c0_34 = arith.constant 0 : index
    %c256_35 = arith.constant 256 : index
    %69 = vector.load %arg2[%c0_34, %c256_35] : memref<128x512xbf16, #tpu.memory_space<vmem>>, vector<128x128xbf16>
    %cst_36 = arith.constant dense<0.000000e+00> : vector<1x128xf32>
    %70 = tpu.matmul %59, %69, %cst_36 {dimension_numbers = #tpu.dot_dimension_numbers<[1], [0], [0], [1], [0, 0, 1, 1], [], []>} : vector<1x128xbf16>, vector<128x128xbf16>, vector<1x128xf32> -> vector<1x128xf32>
    %71 = arith.addf %68, %70 : vector<1x128xf32>
    %72 = vector.extract_strided_slice %58 {offsets = [0, 384], sizes = [1, 128], strides = [1, 1]} : vector<1x512xf32> to vector<1x128xf32>
    %c0_37 = arith.constant 0 : index
    %c384_38 = arith.constant 384 : index
    %73 = vector.load %arg2[%c0_37, %c384_38] : memref<128x512xbf16, #tpu.memory_space<vmem>>, vector<128x128xbf16>
    %cst_39 = arith.constant dense<0.000000e+00> : vector<1x128xf32>
    %74 = tpu.matmul %59, %73, %cst_39 {dimension_numbers = #tpu.dot_dimension_numbers<[1], [0], [0], [1], [0, 0, 1, 1], [], []>} : vector<1x128xbf16>, vector<128x128xbf16>, vector<1x128xf32> -> vector<1x128xf32>
    %75 = arith.addf %72, %74 : vector<1x128xf32>
    %cst_40 = arith.constant 5.000000e-01 : f32
    %76 = vector.broadcast %cst_40 : f32 to vector<1x128xf32>
    %77 = arith.mulf %76, %63 : vector<1x128xf32>
    %78 = math.tanh %77 : vector<1x128xf32>
    %cst_41 = arith.constant 5.000000e-01 : f32
    %79 = vector.broadcast %cst_41 : f32 to vector<1x128xf32>
    %80 = arith.mulf %79, %78 : vector<1x128xf32>
    %cst_42 = arith.constant 5.000000e-01 : f32
    %81 = vector.broadcast %cst_42 : f32 to vector<1x128xf32>
    %82 = arith.addf %80, %81 : vector<1x128xf32>
    %cst_43 = arith.constant 5.000000e-01 : f32
    %83 = vector.broadcast %cst_43 : f32 to vector<1x128xf32>
    %84 = arith.mulf %83, %67 : vector<1x128xf32>
    %85 = math.tanh %84 : vector<1x128xf32>
    %cst_44 = arith.constant 5.000000e-01 : f32
    %86 = vector.broadcast %cst_44 : f32 to vector<1x128xf32>
    %87 = arith.mulf %86, %85 : vector<1x128xf32>
    %cst_45 = arith.constant 5.000000e-01 : f32
    %88 = vector.broadcast %cst_45 : f32 to vector<1x128xf32>
    %89 = arith.addf %87, %88 : vector<1x128xf32>
    %90 = math.tanh %71 : vector<1x128xf32>
    %cst_46 = arith.constant 5.000000e-01 : f32
    %91 = vector.broadcast %cst_46 : f32 to vector<1x128xf32>
    %92 = arith.mulf %91, %75 : vector<1x128xf32>
    %93 = math.tanh %92 : vector<1x128xf32>
    %cst_47 = arith.constant 5.000000e-01 : f32
    %94 = vector.broadcast %cst_47 : f32 to vector<1x128xf32>
    %95 = arith.mulf %94, %93 : vector<1x128xf32>
    %cst_48 = arith.constant 5.000000e-01 : f32
    %96 = vector.broadcast %cst_48 : f32 to vector<1x128xf32>
    %97 = arith.addf %95, %96 : vector<1x128xf32>
    %98 = arith.mulf %89, %54 : vector<1x128xf32>
    %99 = arith.mulf %82, %90 : vector<1x128xf32>
    %100 = arith.addf %98, %99 : vector<1x128xf32>
    %101 = math.tanh %100 : vector<1x128xf32>
    %102 = arith.mulf %97, %101 : vector<1x128xf32>
    %c2_i32 = arith.constant 2 : i32
    %103 = arith.index_cast %c2_i32 : i32 to index
    %c0_49 = arith.constant 0 : index
    %104 = vector.load %arg7[%103, %c0_49] : memref<8x512xf32, #tpu.memory_space<vmem>>, vector<1x512xf32>
    %105 = arith.truncf %102 : vector<1x128xf32> to vector<1x128xbf16>
    %106 = vector.extract_strided_slice %104 {offsets = [0, 0], sizes = [1, 128], strides = [1, 1]} : vector<1x512xf32> to vector<1x128xf32>
    %c0_50 = arith.constant 0 : index
    %c0_51 = arith.constant 0 : index
    %107 = vector.load %arg2[%c0_50, %c0_51] : memref<128x512xbf16, #tpu.memory_space<vmem>>, vector<128x128xbf16>
    %cst_52 = arith.constant dense<0.000000e+00> : vector<1x128xf32>
    %108 = tpu.matmul %105, %107, %cst_52 {dimension_numbers = #tpu.dot_dimension_numbers<[1], [0], [0], [1], [0, 0, 1, 1], [], []>} : vector<1x128xbf16>, vector<128x128xbf16>, vector<1x128xf32> -> vector<1x128xf32>
    %109 = arith.addf %106, %108 : vector<1x128xf32>
    %110 = vector.extract_strided_slice %104 {offsets = [0, 128], sizes = [1, 128], strides = [1, 1]} : vector<1x512xf32> to vector<1x128xf32>
    %c0_53 = arith.constant 0 : index
    %c128_54 = arith.constant 128 : index
    %111 = vector.load %arg2[%c0_53, %c128_54] : memref<128x512xbf16, #tpu.memory_space<vmem>>, vector<128x128xbf16>
    %cst_55 = arith.constant dense<0.000000e+00> : vector<1x128xf32>
    %112 = tpu.matmul %105, %111, %cst_55 {dimension_numbers = #tpu.dot_dimension_numbers<[1], [0], [0], [1], [0, 0, 1, 1], [], []>} : vector<1x128xbf16>, vector<128x128xbf16>, vector<1x128xf32> -> vector<1x128xf32>
    %113 = arith.addf %110, %112 : vector<1x128xf32>
    %114 = vector.extract_strided_slice %104 {offsets = [0, 256], sizes = [1, 128], strides = [1, 1]} : vector<1x512xf32> to vector<1x128xf32>
    %c0_56 = arith.constant 0 : index
    %c256_57 = arith.constant 256 : index
    %115 = vector.load %arg2[%c0_56, %c256_57] : memref<128x512xbf16, #tpu.memory_space<vmem>>, vector<128x128xbf16>
    %cst_58 = arith.constant dense<0.000000e+00> : vector<1x128xf32>
    %116 = tpu.matmul %105, %115, %cst_58 {dimension_numbers = #tpu.dot_dimension_numbers<[1], [0], [0], [1], [0, 0, 1, 1], [], []>} : vector<1x128xbf16>, vector<128x128xbf16>, vector<1x128xf32> -> vector<1x128xf32>
    %117 = arith.addf %114, %116 : vector<1x128xf32>
    %118 = vector.extract_strided_slice %104 {offsets = [0, 384], sizes = [1, 128], strides = [1, 1]} : vector<1x512xf32> to vector<1x128xf32>
    %c0_59 = arith.constant 0 : index
    %c384_60 = arith.constant 384 : index
    %119 = vector.load %arg2[%c0_59, %c384_60] : memref<128x512xbf16, #tpu.memory_space<vmem>>, vector<128x128xbf16>
    %cst_61 = arith.constant dense<0.000000e+00> : vector<1x128xf32>
    %120 = tpu.matmul %105, %119, %cst_61 {dimension_numbers = #tpu.dot_dimension_numbers<[1], [0], [0], [1], [0, 0, 1, 1], [], []>} : vector<1x128xbf16>, vector<128x128xbf16>, vector<1x128xf32> -> vector<1x128xf32>
    %121 = arith.addf %118, %120 : vector<1x128xf32>
    %cst_62 = arith.constant 5.000000e-01 : f32
    %122 = vector.broadcast %cst_62 : f32 to vector<1x128xf32>
    %123 = arith.mulf %122, %109 : vector<1x128xf32>
    %124 = math.tanh %123 : vector<1x128xf32>
    %cst_63 = arith.constant 5.000000e-01 : f32
    %125 = vector.broadcast %cst_63 : f32 to vector<1x128xf32>
    %126 = arith.mulf %125, %124 : vector<1x128xf32>
    %cst_64 = arith.constant 5.000000e-01 : f32
    %127 = vector.broadcast %cst_64 : f32 to vector<1x128xf32>
    %128 = arith.addf %126, %127 : vector<1x128xf32>
    %cst_65 = arith.constant 5.000000e-01 : f32
    %129 = vector.broadcast %cst_65 : f32 to vector<1x128xf32>
    %130 = arith.mulf %129, %113 : vector<1x128xf32>
    %131 = math.tanh %130 : vector<1x128xf32>
    %cst_66 = arith.constant 5.000000e-01 : f32
    %132 = vector.broadcast %cst_66 : f32 to vector<1x128xf32>
    %133 = arith.mulf %132, %131 : vector<1x128xf32>
    %cst_67 = arith.constant 5.000000e-01 : f32
    %134 = vector.broadcast %cst_67 : f32 to vector<1x128xf32>
    %135 = arith.addf %133, %134 : vector<1x128xf32>
    %136 = math.tanh %117 : vector<1x128xf32>
    %cst_68 = arith.constant 5.000000e-01 : f32
    %137 = vector.broadcast %cst_68 : f32 to vector<1x128xf32>
    %138 = arith.mulf %137, %121 : vector<1x128xf32>
    %139 = math.tanh %138 : vector<1x128xf32>
    %cst_69 = arith.constant 5.000000e-01 : f32
    %140 = vector.broadcast %cst_69 : f32 to vector<1x128xf32>
    %141 = arith.mulf %140, %139 : vector<1x128xf32>
    %cst_70 = arith.constant 5.000000e-01 : f32
    %142 = vector.broadcast %cst_70 : f32 to vector<1x128xf32>
    %143 = arith.addf %141, %142 : vector<1x128xf32>
    %144 = arith.mulf %135, %100 : vector<1x128xf32>
    %145 = arith.mulf %128, %136 : vector<1x128xf32>
    %146 = arith.addf %144, %145 : vector<1x128xf32>
    %147 = math.tanh %146 : vector<1x128xf32>
    %148 = arith.mulf %143, %147 : vector<1x128xf32>
    %c3_i32 = arith.constant 3 : i32
    %149 = arith.index_cast %c3_i32 : i32 to index
    %c0_71 = arith.constant 0 : index
    %150 = vector.load %arg7[%149, %c0_71] : memref<8x512xf32, #tpu.memory_space<vmem>>, vector<1x512xf32>
    %151 = arith.truncf %148 : vector<1x128xf32> to vector<1x128xbf16>
    %152 = vector.extract_strided_slice %150 {offsets = [0, 0], sizes = [1, 128], strides = [1, 1]} : vector<1x512xf32> to vector<1x128xf32>
    %c0_72 = arith.constant 0 : index
    %c0_73 = arith.constant 0 : index
    %153 = vector.load %arg2[%c0_72, %c0_73] : memref<128x512xbf16, #tpu.memory_space<vmem>>, vector<128x128xbf16>
    %cst_74 = arith.constant dense<0.000000e+00> : vector<1x128xf32>
    %154 = tpu.matmul %151, %153, %cst_74 {dimension_numbers = #tpu.dot_dimension_numbers<[1], [0], [0], [1], [0, 0, 1, 1], [], []>} : vector<1x128xbf16>, vector<128x128xbf16>, vector<1x128xf32> -> vector<1x128xf32>
    %155 = arith.addf %152, %154 : vector<1x128xf32>
    %156 = vector.extract_strided_slice %150 {offsets = [0, 128], sizes = [1, 128], strides = [1, 1]} : vector<1x512xf32> to vector<1x128xf32>
    %c0_75 = arith.constant 0 : index
    %c128_76 = arith.constant 128 : index
    %157 = vector.load %arg2[%c0_75, %c128_76] : memref<128x512xbf16, #tpu.memory_space<vmem>>, vector<128x128xbf16>
    %cst_77 = arith.constant dense<0.000000e+00> : vector<1x128xf32>
    %158 = tpu.matmul %151, %157, %cst_77 {dimension_numbers = #tpu.dot_dimension_numbers<[1], [0], [0], [1], [0, 0, 1, 1], [], []>} : vector<1x128xbf16>, vector<128x128xbf16>, vector<1x128xf32> -> vector<1x128xf32>
    %159 = arith.addf %156, %158 : vector<1x128xf32>
    %160 = vector.extract_strided_slice %150 {offsets = [0, 256], sizes = [1, 128], strides = [1, 1]} : vector<1x512xf32> to vector<1x128xf32>
    %c0_78 = arith.constant 0 : index
    %c256_79 = arith.constant 256 : index
    %161 = vector.load %arg2[%c0_78, %c256_79] : memref<128x512xbf16, #tpu.memory_space<vmem>>, vector<128x128xbf16>
    %cst_80 = arith.constant dense<0.000000e+00> : vector<1x128xf32>
    %162 = tpu.matmul %151, %161, %cst_80 {dimension_numbers = #tpu.dot_dimension_numbers<[1], [0], [0], [1], [0, 0, 1, 1], [], []>} : vector<1x128xbf16>, vector<128x128xbf16>, vector<1x128xf32> -> vector<1x128xf32>
    %163 = arith.addf %160, %162 : vector<1x128xf32>
    %164 = vector.extract_strided_slice %150 {offsets = [0, 384], sizes = [1, 128], strides = [1, 1]} : vector<1x512xf32> to vector<1x128xf32>
    %c0_81 = arith.constant 0 : index
    %c384_82 = arith.constant 384 : index
    %165 = vector.load %arg2[%c0_81, %c384_82] : memref<128x512xbf16, #tpu.memory_space<vmem>>, vector<128x128xbf16>
    %cst_83 = arith.constant dense<0.000000e+00> : vector<1x128xf32>
    %166 = tpu.matmul %151, %165, %cst_83 {dimension_numbers = #tpu.dot_dimension_numbers<[1], [0], [0], [1], [0, 0, 1, 1], [], []>} : vector<1x128xbf16>, vector<128x128xbf16>, vector<1x128xf32> -> vector<1x128xf32>
    %167 = arith.addf %164, %166 : vector<1x128xf32>
    %cst_84 = arith.constant 5.000000e-01 : f32
    %168 = vector.broadcast %cst_84 : f32 to vector<1x128xf32>
    %169 = arith.mulf %168, %155 : vector<1x128xf32>
    %170 = math.tanh %169 : vector<1x128xf32>
    %cst_85 = arith.constant 5.000000e-01 : f32
    %171 = vector.broadcast %cst_85 : f32 to vector<1x128xf32>
    %172 = arith.mulf %171, %170 : vector<1x128xf32>
    %cst_86 = arith.constant 5.000000e-01 : f32
    %173 = vector.broadcast %cst_86 : f32 to vector<1x128xf32>
    %174 = arith.addf %172, %173 : vector<1x128xf32>
    %cst_87 = arith.constant 5.000000e-01 : f32
    %175 = vector.broadcast %cst_87 : f32 to vector<1x128xf32>
    %176 = arith.mulf %175, %159 : vector<1x128xf32>
    %177 = math.tanh %176 : vector<1x128xf32>
    %cst_88 = arith.constant 5.000000e-01 : f32
    %178 = vector.broadcast %cst_88 : f32 to vector<1x128xf32>
    %179 = arith.mulf %178, %177 : vector<1x128xf32>
    %cst_89 = arith.constant 5.000000e-01 : f32
    %180 = vector.broadcast %cst_89 : f32 to vector<1x128xf32>
    %181 = arith.addf %179, %180 : vector<1x128xf32>
    %182 = math.tanh %163 : vector<1x128xf32>
    %cst_90 = arith.constant 5.000000e-01 : f32
    %183 = vector.broadcast %cst_90 : f32 to vector<1x128xf32>
    %184 = arith.mulf %183, %167 : vector<1x128xf32>
    %185 = math.tanh %184 : vector<1x128xf32>
    %cst_91 = arith.constant 5.000000e-01 : f32
    %186 = vector.broadcast %cst_91 : f32 to vector<1x128xf32>
    %187 = arith.mulf %186, %185 : vector<1x128xf32>
    %cst_92 = arith.constant 5.000000e-01 : f32
    %188 = vector.broadcast %cst_92 : f32 to vector<1x128xf32>
    %189 = arith.addf %187, %188 : vector<1x128xf32>
    %190 = arith.mulf %181, %146 : vector<1x128xf32>
    %191 = arith.mulf %174, %182 : vector<1x128xf32>
    %192 = arith.addf %190, %191 : vector<1x128xf32>
    %193 = math.tanh %192 : vector<1x128xf32>
    %194 = arith.mulf %189, %193 : vector<1x128xf32>
    %c4_i32 = arith.constant 4 : i32
    %195 = arith.index_cast %c4_i32 : i32 to index
    %c0_93 = arith.constant 0 : index
    %196 = vector.load %arg7[%195, %c0_93] : memref<8x512xf32, #tpu.memory_space<vmem>>, vector<1x512xf32>
    %197 = arith.truncf %194 : vector<1x128xf32> to vector<1x128xbf16>
    %198 = vector.extract_strided_slice %196 {offsets = [0, 0], sizes = [1, 128], strides = [1, 1]} : vector<1x512xf32> to vector<1x128xf32>
    %c0_94 = arith.constant 0 : index
    %c0_95 = arith.constant 0 : index
    %199 = vector.load %arg2[%c0_94, %c0_95] : memref<128x512xbf16, #tpu.memory_space<vmem>>, vector<128x128xbf16>
    %cst_96 = arith.constant dense<0.000000e+00> : vector<1x128xf32>
    %200 = tpu.matmul %197, %199, %cst_96 {dimension_numbers = #tpu.dot_dimension_numbers<[1], [0], [0], [1], [0, 0, 1, 1], [], []>} : vector<1x128xbf16>, vector<128x128xbf16>, vector<1x128xf32> -> vector<1x128xf32>
    %201 = arith.addf %198, %200 : vector<1x128xf32>
    %202 = vector.extract_strided_slice %196 {offsets = [0, 128], sizes = [1, 128], strides = [1, 1]} : vector<1x512xf32> to vector<1x128xf32>
    %c0_97 = arith.constant 0 : index
    %c128_98 = arith.constant 128 : index
    %203 = vector.load %arg2[%c0_97, %c128_98] : memref<128x512xbf16, #tpu.memory_space<vmem>>, vector<128x128xbf16>
    %cst_99 = arith.constant dense<0.000000e+00> : vector<1x128xf32>
    %204 = tpu.matmul %197, %203, %cst_99 {dimension_numbers = #tpu.dot_dimension_numbers<[1], [0], [0], [1], [0, 0, 1, 1], [], []>} : vector<1x128xbf16>, vector<128x128xbf16>, vector<1x128xf32> -> vector<1x128xf32>
    %205 = arith.addf %202, %204 : vector<1x128xf32>
    %206 = vector.extract_strided_slice %196 {offsets = [0, 256], sizes = [1, 128], strides = [1, 1]} : vector<1x512xf32> to vector<1x128xf32>
    %c0_100 = arith.constant 0 : index
    %c256_101 = arith.constant 256 : index
    %207 = vector.load %arg2[%c0_100, %c256_101] : memref<128x512xbf16, #tpu.memory_space<vmem>>, vector<128x128xbf16>
    %cst_102 = arith.constant dense<0.000000e+00> : vector<1x128xf32>
    %208 = tpu.matmul %197, %207, %cst_102 {dimension_numbers = #tpu.dot_dimension_numbers<[1], [0], [0], [1], [0, 0, 1, 1], [], []>} : vector<1x128xbf16>, vector<128x128xbf16>, vector<1x128xf32> -> vector<1x128xf32>
    %209 = arith.addf %206, %208 : vector<1x128xf32>
    %210 = vector.extract_strided_slice %196 {offsets = [0, 384], sizes = [1, 128], strides = [1, 1]} : vector<1x512xf32> to vector<1x128xf32>
    %c0_103 = arith.constant 0 : index
    %c384_104 = arith.constant 384 : index
    %211 = vector.load %arg2[%c0_103, %c384_104] : memref<128x512xbf16, #tpu.memory_space<vmem>>, vector<128x128xbf16>
    %cst_105 = arith.constant dense<0.000000e+00> : vector<1x128xf32>
    %212 = tpu.matmul %197, %211, %cst_105 {dimension_numbers = #tpu.dot_dimension_numbers<[1], [0], [0], [1], [0, 0, 1, 1], [], []>} : vector<1x128xbf16>, vector<128x128xbf16>, vector<1x128xf32> -> vector<1x128xf32>
    %213 = arith.addf %210, %212 : vector<1x128xf32>
    %cst_106 = arith.constant 5.000000e-01 : f32
    %214 = vector.broadcast %cst_106 : f32 to vector<1x128xf32>
    %215 = arith.mulf %214, %201 : vector<1x128xf32>
    %216 = math.tanh %215 : vector<1x128xf32>
    %cst_107 = arith.constant 5.000000e-01 : f32
    %217 = vector.broadcast %cst_107 : f32 to vector<1x128xf32>
    %218 = arith.mulf %217, %216 : vector<1x128xf32>
    %cst_108 = arith.constant 5.000000e-01 : f32
    %219 = vector.broadcast %cst_108 : f32 to vector<1x128xf32>
    %220 = arith.addf %218, %219 : vector<1x128xf32>
    %cst_109 = arith.constant 5.000000e-01 : f32
    %221 = vector.broadcast %cst_109 : f32 to vector<1x128xf32>
    %222 = arith.mulf %221, %205 : vector<1x128xf32>
    %223 = math.tanh %222 : vector<1x128xf32>
    %cst_110 = arith.constant 5.000000e-01 : f32
    %224 = vector.broadcast %cst_110 : f32 to vector<1x128xf32>
    %225 = arith.mulf %224, %223 : vector<1x128xf32>
    %cst_111 = arith.constant 5.000000e-01 : f32
    %226 = vector.broadcast %cst_111 : f32 to vector<1x128xf32>
    %227 = arith.addf %225, %226 : vector<1x128xf32>
    %228 = math.tanh %209 : vector<1x128xf32>
    %cst_112 = arith.constant 5.000000e-01 : f32
    %229 = vector.broadcast %cst_112 : f32 to vector<1x128xf32>
    %230 = arith.mulf %229, %213 : vector<1x128xf32>
    %231 = math.tanh %230 : vector<1x128xf32>
    %cst_113 = arith.constant 5.000000e-01 : f32
    %232 = vector.broadcast %cst_113 : f32 to vector<1x128xf32>
    %233 = arith.mulf %232, %231 : vector<1x128xf32>
    %cst_114 = arith.constant 5.000000e-01 : f32
    %234 = vector.broadcast %cst_114 : f32 to vector<1x128xf32>
    %235 = arith.addf %233, %234 : vector<1x128xf32>
    %236 = arith.mulf %227, %192 : vector<1x128xf32>
    %237 = arith.mulf %220, %228 : vector<1x128xf32>
    %238 = arith.addf %236, %237 : vector<1x128xf32>
    %239 = math.tanh %238 : vector<1x128xf32>
    %240 = arith.mulf %235, %239 : vector<1x128xf32>
    %c5_i32 = arith.constant 5 : i32
    %241 = arith.index_cast %c5_i32 : i32 to index
    %c0_115 = arith.constant 0 : index
    %242 = vector.load %arg7[%241, %c0_115] : memref<8x512xf32, #tpu.memory_space<vmem>>, vector<1x512xf32>
    %243 = arith.truncf %240 : vector<1x128xf32> to vector<1x128xbf16>
    %244 = vector.extract_strided_slice %242 {offsets = [0, 0], sizes = [1, 128], strides = [1, 1]} : vector<1x512xf32> to vector<1x128xf32>
    %c0_116 = arith.constant 0 : index
    %c0_117 = arith.constant 0 : index
    %245 = vector.load %arg2[%c0_116, %c0_117] : memref<128x512xbf16, #tpu.memory_space<vmem>>, vector<128x128xbf16>
    %cst_118 = arith.constant dense<0.000000e+00> : vector<1x128xf32>
    %246 = tpu.matmul %243, %245, %cst_118 {dimension_numbers = #tpu.dot_dimension_numbers<[1], [0], [0], [1], [0, 0, 1, 1], [], []>} : vector<1x128xbf16>, vector<128x128xbf16>, vector<1x128xf32> -> vector<1x128xf32>
    %247 = arith.addf %244, %246 : vector<1x128xf32>
    %248 = vector.extract_strided_slice %242 {offsets = [0, 128], sizes = [1, 128], strides = [1, 1]} : vector<1x512xf32> to vector<1x128xf32>
    %c0_119 = arith.constant 0 : index
    %c128_120 = arith.constant 128 : index
    %249 = vector.load %arg2[%c0_119, %c128_120] : memref<128x512xbf16, #tpu.memory_space<vmem>>, vector<128x128xbf16>
    %cst_121 = arith.constant dense<0.000000e+00> : vector<1x128xf32>
    %250 = tpu.matmul %243, %249, %cst_121 {dimension_numbers = #tpu.dot_dimension_numbers<[1], [0], [0], [1], [0, 0, 1, 1], [], []>} : vector<1x128xbf16>, vector<128x128xbf16>, vector<1x128xf32> -> vector<1x128xf32>
    %251 = arith.addf %248, %250 : vector<1x128xf32>
    %252 = vector.extract_strided_slice %242 {offsets = [0, 256], sizes = [1, 128], strides = [1, 1]} : vector<1x512xf32> to vector<1x128xf32>
    %c0_122 = arith.constant 0 : index
    %c256_123 = arith.constant 256 : index
    %253 = vector.load %arg2[%c0_122, %c256_123] : memref<128x512xbf16, #tpu.memory_space<vmem>>, vector<128x128xbf16>
    %cst_124 = arith.constant dense<0.000000e+00> : vector<1x128xf32>
    %254 = tpu.matmul %243, %253, %cst_124 {dimension_numbers = #tpu.dot_dimension_numbers<[1], [0], [0], [1], [0, 0, 1, 1], [], []>} : vector<1x128xbf16>, vector<128x128xbf16>, vector<1x128xf32> -> vector<1x128xf32>
    %255 = arith.addf %252, %254 : vector<1x128xf32>
    %256 = vector.extract_strided_slice %242 {offsets = [0, 384], sizes = [1, 128], strides = [1, 1]} : vector<1x512xf32> to vector<1x128xf32>
    %c0_125 = arith.constant 0 : index
    %c384_126 = arith.constant 384 : index
    %257 = vector.load %arg2[%c0_125, %c384_126] : memref<128x512xbf16, #tpu.memory_space<vmem>>, vector<128x128xbf16>
    %cst_127 = arith.constant dense<0.000000e+00> : vector<1x128xf32>
    %258 = tpu.matmul %243, %257, %cst_127 {dimension_numbers = #tpu.dot_dimension_numbers<[1], [0], [0], [1], [0, 0, 1, 1], [], []>} : vector<1x128xbf16>, vector<128x128xbf16>, vector<1x128xf32> -> vector<1x128xf32>
    %259 = arith.addf %256, %258 : vector<1x128xf32>
    %cst_128 = arith.constant 5.000000e-01 : f32
    %260 = vector.broadcast %cst_128 : f32 to vector<1x128xf32>
    %261 = arith.mulf %260, %247 : vector<1x128xf32>
    %262 = math.tanh %261 : vector<1x128xf32>
    %cst_129 = arith.constant 5.000000e-01 : f32
    %263 = vector.broadcast %cst_129 : f32 to vector<1x128xf32>
    %264 = arith.mulf %263, %262 : vector<1x128xf32>
    %cst_130 = arith.constant 5.000000e-01 : f32
    %265 = vector.broadcast %cst_130 : f32 to vector<1x128xf32>
    %266 = arith.addf %264, %265 : vector<1x128xf32>
    %cst_131 = arith.constant 5.000000e-01 : f32
    %267 = vector.broadcast %cst_131 : f32 to vector<1x128xf32>
    %268 = arith.mulf %267, %251 : vector<1x128xf32>
    %269 = math.tanh %268 : vector<1x128xf32>
    %cst_132 = arith.constant 5.000000e-01 : f32
    %270 = vector.broadcast %cst_132 : f32 to vector<1x128xf32>
    %271 = arith.mulf %270, %269 : vector<1x128xf32>
    %cst_133 = arith.constant 5.000000e-01 : f32
    %272 = vector.broadcast %cst_133 : f32 to vector<1x128xf32>
    %273 = arith.addf %271, %272 : vector<1x128xf32>
    %274 = math.tanh %255 : vector<1x128xf32>
    %cst_134 = arith.constant 5.000000e-01 : f32
    %275 = vector.broadcast %cst_134 : f32 to vector<1x128xf32>
    %276 = arith.mulf %275, %259 : vector<1x128xf32>
    %277 = math.tanh %276 : vector<1x128xf32>
    %cst_135 = arith.constant 5.000000e-01 : f32
    %278 = vector.broadcast %cst_135 : f32 to vector<1x128xf32>
    %279 = arith.mulf %278, %277 : vector<1x128xf32>
    %cst_136 = arith.constant 5.000000e-01 : f32
    %280 = vector.broadcast %cst_136 : f32 to vector<1x128xf32>
    %281 = arith.addf %279, %280 : vector<1x128xf32>
    %282 = arith.mulf %273, %238 : vector<1x128xf32>
    %283 = arith.mulf %266, %274 : vector<1x128xf32>
    %284 = arith.addf %282, %283 : vector<1x128xf32>
    %285 = math.tanh %284 : vector<1x128xf32>
    %286 = arith.mulf %281, %285 : vector<1x128xf32>
    %c6_i32 = arith.constant 6 : i32
    %287 = arith.index_cast %c6_i32 : i32 to index
    %c0_137 = arith.constant 0 : index
    %288 = vector.load %arg7[%287, %c0_137] : memref<8x512xf32, #tpu.memory_space<vmem>>, vector<1x512xf32>
    %289 = arith.truncf %286 : vector<1x128xf32> to vector<1x128xbf16>
    %290 = vector.extract_strided_slice %288 {offsets = [0, 0], sizes = [1, 128], strides = [1, 1]} : vector<1x512xf32> to vector<1x128xf32>
    %c0_138 = arith.constant 0 : index
    %c0_139 = arith.constant 0 : index
    %291 = vector.load %arg2[%c0_138, %c0_139] : memref<128x512xbf16, #tpu.memory_space<vmem>>, vector<128x128xbf16>
    %cst_140 = arith.constant dense<0.000000e+00> : vector<1x128xf32>
    %292 = tpu.matmul %289, %291, %cst_140 {dimension_numbers = #tpu.dot_dimension_numbers<[1], [0], [0], [1], [0, 0, 1, 1], [], []>} : vector<1x128xbf16>, vector<128x128xbf16>, vector<1x128xf32> -> vector<1x128xf32>
    %293 = arith.addf %290, %292 : vector<1x128xf32>
    %294 = vector.extract_strided_slice %288 {offsets = [0, 128], sizes = [1, 128], strides = [1, 1]} : vector<1x512xf32> to vector<1x128xf32>
    %c0_141 = arith.constant 0 : index
    %c128_142 = arith.constant 128 : index
    %295 = vector.load %arg2[%c0_141, %c128_142] : memref<128x512xbf16, #tpu.memory_space<vmem>>, vector<128x128xbf16>
    %cst_143 = arith.constant dense<0.000000e+00> : vector<1x128xf32>
    %296 = tpu.matmul %289, %295, %cst_143 {dimension_numbers = #tpu.dot_dimension_numbers<[1], [0], [0], [1], [0, 0, 1, 1], [], []>} : vector<1x128xbf16>, vector<128x128xbf16>, vector<1x128xf32> -> vector<1x128xf32>
    %297 = arith.addf %294, %296 : vector<1x128xf32>
    %298 = vector.extract_strided_slice %288 {offsets = [0, 256], sizes = [1, 128], strides = [1, 1]} : vector<1x512xf32> to vector<1x128xf32>
    %c0_144 = arith.constant 0 : index
    %c256_145 = arith.constant 256 : index
    %299 = vector.load %arg2[%c0_144, %c256_145] : memref<128x512xbf16, #tpu.memory_space<vmem>>, vector<128x128xbf16>
    %cst_146 = arith.constant dense<0.000000e+00> : vector<1x128xf32>
    %300 = tpu.matmul %289, %299, %cst_146 {dimension_numbers = #tpu.dot_dimension_numbers<[1], [0], [0], [1], [0, 0, 1, 1], [], []>} : vector<1x128xbf16>, vector<128x128xbf16>, vector<1x128xf32> -> vector<1x128xf32>
    %301 = arith.addf %298, %300 : vector<1x128xf32>
    %302 = vector.extract_strided_slice %288 {offsets = [0, 384], sizes = [1, 128], strides = [1, 1]} : vector<1x512xf32> to vector<1x128xf32>
    %c0_147 = arith.constant 0 : index
    %c384_148 = arith.constant 384 : index
    %303 = vector.load %arg2[%c0_147, %c384_148] : memref<128x512xbf16, #tpu.memory_space<vmem>>, vector<128x128xbf16>
    %cst_149 = arith.constant dense<0.000000e+00> : vector<1x128xf32>
    %304 = tpu.matmul %289, %303, %cst_149 {dimension_numbers = #tpu.dot_dimension_numbers<[1], [0], [0], [1], [0, 0, 1, 1], [], []>} : vector<1x128xbf16>, vector<128x128xbf16>, vector<1x128xf32> -> vector<1x128xf32>
    %305 = arith.addf %302, %304 : vector<1x128xf32>
    %cst_150 = arith.constant 5.000000e-01 : f32
    %306 = vector.broadcast %cst_150 : f32 to vector<1x128xf32>
    %307 = arith.mulf %306, %293 : vector<1x128xf32>
    %308 = math.tanh %307 : vector<1x128xf32>
    %cst_151 = arith.constant 5.000000e-01 : f32
    %309 = vector.broadcast %cst_151 : f32 to vector<1x128xf32>
    %310 = arith.mulf %309, %308 : vector<1x128xf32>
    %cst_152 = arith.constant 5.000000e-01 : f32
    %311 = vector.broadcast %cst_152 : f32 to vector<1x128xf32>
    %312 = arith.addf %310, %311 : vector<1x128xf32>
    %cst_153 = arith.constant 5.000000e-01 : f32
    %313 = vector.broadcast %cst_153 : f32 to vector<1x128xf32>
    %314 = arith.mulf %313, %297 : vector<1x128xf32>
    %315 = math.tanh %314 : vector<1x128xf32>
    %cst_154 = arith.constant 5.000000e-01 : f32
    %316 = vector.broadcast %cst_154 : f32 to vector<1x128xf32>
    %317 = arith.mulf %316, %315 : vector<1x128xf32>
    %cst_155 = arith.constant 5.000000e-01 : f32
    %318 = vector.broadcast %cst_155 : f32 to vector<1x128xf32>
    %319 = arith.addf %317, %318 : vector<1x128xf32>
    %320 = math.tanh %301 : vector<1x128xf32>
    %cst_156 = arith.constant 5.000000e-01 : f32
    %321 = vector.broadcast %cst_156 : f32 to vector<1x128xf32>
    %322 = arith.mulf %321, %305 : vector<1x128xf32>
    %323 = math.tanh %322 : vector<1x128xf32>
    %cst_157 = arith.constant 5.000000e-01 : f32
    %324 = vector.broadcast %cst_157 : f32 to vector<1x128xf32>
    %325 = arith.mulf %324, %323 : vector<1x128xf32>
    %cst_158 = arith.constant 5.000000e-01 : f32
    %326 = vector.broadcast %cst_158 : f32 to vector<1x128xf32>
    %327 = arith.addf %325, %326 : vector<1x128xf32>
    %328 = arith.mulf %319, %284 : vector<1x128xf32>
    %329 = arith.mulf %312, %320 : vector<1x128xf32>
    %330 = arith.addf %328, %329 : vector<1x128xf32>
    %331 = math.tanh %330 : vector<1x128xf32>
    %332 = arith.mulf %327, %331 : vector<1x128xf32>
    %c7_i32 = arith.constant 7 : i32
    %333 = arith.index_cast %c7_i32 : i32 to index
    %c0_159 = arith.constant 0 : index
    %334 = vector.load %arg7[%333, %c0_159] : memref<8x512xf32, #tpu.memory_space<vmem>>, vector<1x512xf32>
    %335 = arith.truncf %332 : vector<1x128xf32> to vector<1x128xbf16>
    %336 = vector.extract_strided_slice %334 {offsets = [0, 0], sizes = [1, 128], strides = [1, 1]} : vector<1x512xf32> to vector<1x128xf32>
    %c0_160 = arith.constant 0 : index
    %c0_161 = arith.constant 0 : index
    %337 = vector.load %arg2[%c0_160, %c0_161] : memref<128x512xbf16, #tpu.memory_space<vmem>>, vector<128x128xbf16>
    %cst_162 = arith.constant dense<0.000000e+00> : vector<1x128xf32>
    %338 = tpu.matmul %335, %337, %cst_162 {dimension_numbers = #tpu.dot_dimension_numbers<[1], [0], [0], [1], [0, 0, 1, 1], [], []>} : vector<1x128xbf16>, vector<128x128xbf16>, vector<1x128xf32> -> vector<1x128xf32>
    %339 = arith.addf %336, %338 : vector<1x128xf32>
    %340 = vector.extract_strided_slice %334 {offsets = [0, 128], sizes = [1, 128], strides = [1, 1]} : vector<1x512xf32> to vector<1x128xf32>
    %c0_163 = arith.constant 0 : index
    %c128_164 = arith.constant 128 : index
    %341 = vector.load %arg2[%c0_163, %c128_164] : memref<128x512xbf16, #tpu.memory_space<vmem>>, vector<128x128xbf16>
    %cst_165 = arith.constant dense<0.000000e+00> : vector<1x128xf32>
    %342 = tpu.matmul %335, %341, %cst_165 {dimension_numbers = #tpu.dot_dimension_numbers<[1], [0], [0], [1], [0, 0, 1, 1], [], []>} : vector<1x128xbf16>, vector<128x128xbf16>, vector<1x128xf32> -> vector<1x128xf32>
    %343 = arith.addf %340, %342 : vector<1x128xf32>
    %344 = vector.extract_strided_slice %334 {offsets = [0, 256], sizes = [1, 128], strides = [1, 1]} : vector<1x512xf32> to vector<1x128xf32>
    %c0_166 = arith.constant 0 : index
    %c256_167 = arith.constant 256 : index
    %345 = vector.load %arg2[%c0_166, %c256_167] : memref<128x512xbf16, #tpu.memory_space<vmem>>, vector<128x128xbf16>
    %cst_168 = arith.constant dense<0.000000e+00> : vector<1x128xf32>
    %346 = tpu.matmul %335, %345, %cst_168 {dimension_numbers = #tpu.dot_dimension_numbers<[1], [0], [0], [1], [0, 0, 1, 1], [], []>} : vector<1x128xbf16>, vector<128x128xbf16>, vector<1x128xf32> -> vector<1x128xf32>
    %347 = arith.addf %344, %346 : vector<1x128xf32>
    %348 = vector.extract_strided_slice %334 {offsets = [0, 384], sizes = [1, 128], strides = [1, 1]} : vector<1x512xf32> to vector<1x128xf32>
    %c0_169 = arith.constant 0 : index
    %c384_170 = arith.constant 384 : index
    %349 = vector.load %arg2[%c0_169, %c384_170] : memref<128x512xbf16, #tpu.memory_space<vmem>>, vector<128x128xbf16>
    %cst_171 = arith.constant dense<0.000000e+00> : vector<1x128xf32>
    %350 = tpu.matmul %335, %349, %cst_171 {dimension_numbers = #tpu.dot_dimension_numbers<[1], [0], [0], [1], [0, 0, 1, 1], [], []>} : vector<1x128xbf16>, vector<128x128xbf16>, vector<1x128xf32> -> vector<1x128xf32>
    %351 = arith.addf %348, %350 : vector<1x128xf32>
    %cst_172 = arith.constant 5.000000e-01 : f32
    %352 = vector.broadcast %cst_172 : f32 to vector<1x128xf32>
    %353 = arith.mulf %352, %339 : vector<1x128xf32>
    %354 = math.tanh %353 : vector<1x128xf32>
    %cst_173 = arith.constant 5.000000e-01 : f32
    %355 = vector.broadcast %cst_173 : f32 to vector<1x128xf32>
    %356 = arith.mulf %355, %354 : vector<1x128xf32>
    %cst_174 = arith.constant 5.000000e-01 : f32
    %357 = vector.broadcast %cst_174 : f32 to vector<1x128xf32>
    %358 = arith.addf %356, %357 : vector<1x128xf32>
    %cst_175 = arith.constant 5.000000e-01 : f32
    %359 = vector.broadcast %cst_175 : f32 to vector<1x128xf32>
    %360 = arith.mulf %359, %343 : vector<1x128xf32>
    %361 = math.tanh %360 : vector<1x128xf32>
    %cst_176 = arith.constant 5.000000e-01 : f32
    %362 = vector.broadcast %cst_176 : f32 to vector<1x128xf32>
    %363 = arith.mulf %362, %361 : vector<1x128xf32>
    %cst_177 = arith.constant 5.000000e-01 : f32
    %364 = vector.broadcast %cst_177 : f32 to vector<1x128xf32>
    %365 = arith.addf %363, %364 : vector<1x128xf32>
    %366 = math.tanh %347 : vector<1x128xf32>
    %cst_178 = arith.constant 5.000000e-01 : f32
    %367 = vector.broadcast %cst_178 : f32 to vector<1x128xf32>
    %368 = arith.mulf %367, %351 : vector<1x128xf32>
    %369 = math.tanh %368 : vector<1x128xf32>
    %cst_179 = arith.constant 5.000000e-01 : f32
    %370 = vector.broadcast %cst_179 : f32 to vector<1x128xf32>
    %371 = arith.mulf %370, %369 : vector<1x128xf32>
    %cst_180 = arith.constant 5.000000e-01 : f32
    %372 = vector.broadcast %cst_180 : f32 to vector<1x128xf32>
    %373 = arith.addf %371, %372 : vector<1x128xf32>
    %374 = arith.mulf %365, %330 : vector<1x128xf32>
    %375 = arith.mulf %358, %366 : vector<1x128xf32>
    %376 = arith.addf %374, %375 : vector<1x128xf32>
    %377 = math.tanh %376 : vector<1x128xf32>
    %378 = arith.mulf %373, %377 : vector<1x128xf32>
    %c8_i32 = arith.constant 8 : i32
    %c0_181 = arith.constant 0 : index
    %c0_182 = arith.constant 0 : index
    %379 = vector.load %arg4[%c0_181, %c0_182] : memref<1x128xf32, #tpu.memory_space<vmem>>, vector<1x128xf32>
    %380 = arith.mulf %378, %379 : vector<1x128xf32>
    %cst_183 = arith.constant dense<0.000000e+00> : vector<1xf32>
    %381 = vector.multi_reduction <add>, %380, %cst_183 [1] : vector<1x128xf32> to vector<1xf32>
    %382 = vector.shape_cast %381 : vector<1xf32> to vector<1x1xf32>
    %c0_184 = arith.constant 0 : index
    %383 = memref.load %arg5[%c0_184] : memref<1xf32, #tpu.memory_space<smem>>
    %384 = vector.broadcast %383 : f32 to vector<1x1xf32>
    %385 = arith.addf %382, %384 : vector<1x1xf32>
    %c0_185 = arith.constant 0 : index
    %c0_186 = arith.constant 0 : index
    %386 = vector.load %arg6[%c0_185, %c0_186] : memref<1x1xf32, #tpu.memory_space<vmem>>, vector<1x1xf32>
    tpu.vector_store %arg6[%c0_185, %c0_186], %385 {strides = array<i32>} : memref<1x1xf32, #tpu.memory_space<vmem>>, vector<1x1xf32>,
    return
  }
}

</mosaic_0001>

<bundles_post_ra>
// kernel: lstm_forward.1
= control target key start
LH: loop header
LB: loop body
LE: loop exit
PB: predicated region body
PF: predicated region fallthrough
CT: control target
= control target key end

     0   :  { %12 = vsyncpa [#allocation5], 0  ;;  %s1738_s0 = inlined_call_operand.vmem [shape: f32[8,1], index: 0, kind: input, shape index: {}]   ;;  %s1739_s1 = inlined_call_operand.vmem [shape: f32[1,512], index: 1, kind: input, shape index: {}]   ;;  %s1740_s2 = inlined_call_operand.hbm [shape: bf16[128,512], index: 2, kind: input, shape index: {}]   ;;  %s1741_s3 = inlined_call_operand.vmem [shape: f32[1,512], index: 3, kind: input, shape index: {}]   ;;  %s1742_s4 = inlined_call_operand.vmem [shape: f32[1,128], index: 4, kind: input, shape index: {}]   ;;  %s1743_s5 = inlined_call_operand.<no memory space> [shape: f32[1], index: 5, kind: input, shape index: {}]   ;;  %s1744_s6 = inlined_call_operand.hbm [shape: f32[1,1], index: 6, kind: output, shape index: {}]  }
   0x1   :  { %13 = vsyncpa [#allocation6], 0  ;;  %s22_s23 = sshll.u32 %s1740_s2, 4  ;;  %s1332_s24 = smov [#allocation4]   ;;  %s23_s23 = int_to_ptr.hbm [resolvable:$true] %s22_s23 }
   0x2   :  { %s24_s25 = sshll.u32 %s1332_s24, 4  ;;  %s1333_s26 = smov 256   ;;  %s25_s25 = int_to_ptr.vmem [resolvable:$true] %s24_s25 }
   0x3   :  { %s1334_s27 = smov 16  }
   0x4   :  { %30 = dma.hbm_to_vmem [thread:$0]  %s23_s23, 4096, %s25_s25, [#allocation5], %s1333_s26, %s1333_s26, %s1334_s27  }
   0x5   :  { %1328 = dma.done.wait [#allocation5], 4096  }
   0x6   :  { %1329 = vsyncadd [#allocation5], 4294963200  ;;  %v1335_v0 = vmov 0   ;;  %v1064_v1 = vld [vmem:[#allocation4 + $0xe0] sm:$0xf]  ;;  %vm1008_vm0 = vcmask 1040384  }
   0x7   :  { %1199 = vset.pattern.permute.xlu0 %v1335_v0  ;;  %v1169_v2 = vld [vmem:[#allocation4 + $0xec] sm:$0xf0]  ;;  %v1096_v3 = vld [vmem:[#allocation4 + $0xe4] sm:$0xf]  ;;  %v1177_v5 = vld [vmem:[#allocation4 + $0xf0] sm:$0xf0] }
   0x8   :  { %v1376_v4 = vor.u32 %v1169_v2, %v1064_v1  ;;  %v1128_v6 = vld [vmem:[#allocation4 + $0xe8] sm:$0xf]  ;;  %v1185_v7 = vld [vmem:[#allocation4 + $0xf4] sm:$0xf0]  ;;  %v1378_v8 = vor.u32 %v1177_v5, %v1096_v3  ;;  %v1160_v10 = vld [vmem:[#allocation4 + $0xec] sm:$0xf] }
   0x9   :  { %v1380_v9 = vor.u32 %v1185_v7, %v1128_v6  ;;  %v1193_v11 = vld [vmem:[#allocation4 + $0xf8] sm:$0xf0]  ;;  %v1060_v12 = vld [vmem:[#allocation4 + $0xc0] sm:$0xf]  ;;  %v1168_v14 = vld [vmem:[#allocation4 + $0xcc] sm:$0xf0] }
   0xa   :  { %145 = vmatpush.bf16.msra.mxu0 %v1376_v4  ;;  %v1383_v13 = vor.u32 %v1193_v11, %v1160_v10  ;;  %v1092_v15 = vld [vmem:[#allocation4 + $0xc4] sm:$0xf]  ;;  %v1176_v16 = vld [vmem:[#allocation4 + $0xd0] sm:$0xf0]  ;;  %223 = vmatpush.bf16.msra.mxu1 %v1378_v8  ;;  %v1387_v17 = vor.u32 %v1168_v14, %v1060_v12  ;;  %v1124_v19 = vld [vmem:[#allocation4 + $0xc8] sm:$0xf] }
   0xb   :  { %304 = vmatpush.bf16.msra.mxu2 %v1380_v9  ;;  %v1389_v18 = vor.u32 %v1176_v16, %v1092_v15  ;;  %v1184_v20 = vld [vmem:[#allocation4 + $0xd4] sm:$0xf0]  ;;  %v1156_v21 = vld [vmem:[#allocation4 + $0xcc] sm:$0xf]  ;;  %v1192_v23 = vld [vmem:[#allocation4 + $0xd8] sm:$0xf0] }
   0xc   :  { %384 = vmatpush.bf16.msra.mxu3 %v1383_v13  ;;  %v1392_v22 = vor.u32 %v1184_v20, %v1124_v19  ;;  %v1056_v24 = vld [vmem:[#allocation4 + $0xa0] sm:$0xf]  ;;  %v1167_v25 = vld [vmem:[#allocation4 + $0xac] sm:$0xf0]  ;;  %v1394_v26 = vor.u32 %v1192_v23, %v1156_v21  ;;  %v1088_v27 = vld [vmem:[#allocation4 + $0xa4] sm:$0xf] }
   0xd   :  { %v1175_v28 = vld [vmem:[#allocation4 + $0xb0] sm:$0xf0]  ;;  %v1120_v29 = vld [vmem:[#allocation4 + $0xa8] sm:$0xf]  ;;  %v1397_v30 = vor.u32 %v1167_v25, %v1056_v24  ;;  %v1183_v31 = vld [vmem:[#allocation4 + $0xb4] sm:$0xf0] }
   0xe   :  { %146 = vmatpush.bf16.msra.mxu0 %v1387_v17  ;;  %v1152_v32 = vld [vmem:[#allocation4 + $0xac] sm:$0xf]  ;;  %v1191_v33 = vld [vmem:[#allocation4 + $0xb8] sm:$0xf0]  ;;  %224 = vmatpush.bf16.msra.mxu1 %v1389_v18  ;;  %v1401_v34 = vor.u32 %v1175_v28, %v1088_v27  ;;  %v1403_v35 = vor.u32 %v1183_v31, %v1120_v29  ;;  %v1052_v36 = vld [vmem:[#allocation4 + $0x80] sm:$0xf] }
   0xf   :  { %305 = vmatpush.bf16.msra.mxu2 %v1392_v22  ;;  %v1166_v37 = vld [vmem:[#allocation4 + $0x8c] sm:$0xf0]  ;;  %v1084_v38 = vld [vmem:[#allocation4 + $0x84] sm:$0xf]  ;;  %v1406_v39 = vor.u32 %v1191_v33, %v1152_v32  ;;  %v1174_v40 = vld [vmem:[#allocation4 + $0x90] sm:$0xf0] }
  0x10   :  { %385 = vmatpush.bf16.msra.mxu3 %v1394_v26  ;;  %v1116_v41 = vld [vmem:[#allocation4 + $0x88] sm:$0xf]  ;;  %v1182_v42 = vld [vmem:[#allocation4 + $0x94] sm:$0xf0]  ;;  %v1148_v43 = vld [vmem:[#allocation4 + $0x8c] sm:$0xf]  ;;  %v1409_v45 = vor.u32 %v1166_v37, %v1052_v36  ;;  %v1413_v46 = vor.u32 %v1174_v40, %v1084_v38 }
  0x11   :  { %v1190_v44 = vld [vmem:[#allocation4 + $0x98] sm:$0xf0]  ;;  %v1415_v47 = vor.u32 %v1182_v42, %v1116_v41  ;;  %v1048_v48 = vld [vmem:[#allocation4 + $0x60] sm:$0xf]  ;;  %v1165_v49 = vld [vmem:[#allocation4 + $0x6c] sm:$0xf0] }
  0x12   :  { %147 = vmatpush.bf16.msra.mxu0 %v1397_v30  ;;  %225 = vmatpush.bf16.msra.mxu1 %v1401_v34  ;;  %v1080_v50 = vld [vmem:[#allocation4 + $0x64] sm:$0xf]  ;;  %v1418_v51 = vor.u32 %v1190_v44, %v1148_v43  ;;  %v1173_v52 = vld [vmem:[#allocation4 + $0x70] sm:$0xf0]  ;;  %v1112_v53 = vld [vmem:[#allocation4 + $0x68] sm:$0xf]  ;;  %v1421_v57 = vor.u32 %v1165_v49, %v1048_v48 }
  0x13   :  { %306 = vmatpush.bf16.msra.mxu2 %v1403_v35  ;;  %v1181_v54 = vld [vmem:[#allocation4 + $0x74] sm:$0xf0]  ;;  %v1144_v55 = vld [vmem:[#allocation4 + $0x6c] sm:$0xf]  ;;  %v1189_v56 = vld [vmem:[#allocation4 + $0x78] sm:$0xf0]  ;;  %v1425_v58 = vor.u32 %v1173_v52, %v1080_v50 }
  0x14   :  { %386 = vmatpush.bf16.msra.mxu3 %v1406_v39  ;;  %v1427_v59 = vor.u32 %v1181_v54, %v1112_v53  ;;  %v1044_v60 = vld [vmem:[#allocation4 + $0x40] sm:$0xf]  ;;  %v1164_v61 = vld [vmem:[#allocation4 + $0x4c] sm:$0xf0]  ;;  %v1076_v62 = vld [vmem:[#allocation4 + $0x44] sm:$0xf]  ;;  %v1430_v63 = vor.u32 %v1189_v56, %v1144_v55 }
  0x15   :  { %v1172_v1 = vld [vmem:[#allocation4 + $0x50] sm:$0xf0]  ;;  %v1108_v2 = vld [vmem:[#allocation4 + $0x48] sm:$0xf]  ;;  %v1180_v3 = vld [vmem:[#allocation4 + $0x54] sm:$0xf0]  ;;  %v1433_v7 = vor.u32 %v1164_v61, %v1044_v60 }
  0x16   :  { %148 = vmatpush.bf16.msra.mxu0 %v1409_v45  ;;  %226 = vmatpush.bf16.msra.mxu1 %v1413_v46  ;;  %v1140_v5 = vld [vmem:[#allocation4 + $0x4c] sm:$0xf]  ;;  %v1188_v6 = vld [vmem:[#allocation4 + $0x58] sm:$0xf0]  ;;  %v1040_v10 = vld [vmem:[#allocation4 + $0x20] sm:$0xf]  ;;  %v1437_v11 = vor.u32 %v1172_v1, %v1076_v62  ;;  %v1439_v12 = vor.u32 %v1180_v3, %v1108_v2 }
  0x17   :  { %307 = vmatpush.bf16.msra.mxu2 %v1415_v47  ;;  %v1163_v14 = vld [vmem:[#allocation4 + $0x2c] sm:$0xf0]  ;;  %v1072_v15 = vld [vmem:[#allocation4 + $0x24] sm:$0xf]  ;;  %v1171_v16 = vld [vmem:[#allocation4 + $0x30] sm:$0xf0]  ;;  %v1442_v19 = vor.u32 %v1188_v6, %v1140_v5 }
  0x18   :  { %387 = vmatpush.bf16.msra.mxu3 %v1418_v51  ;;  %v1104_v20 = vld [vmem:[#allocation4 + $0x28] sm:$0xf]  ;;  %v1179_v21 = vld [vmem:[#allocation4 + $0x34] sm:$0xf0]  ;;  %v42_v23 = vld [vmem:[%s1738_s0] sm:$0xff]  ;;  %v1448_v27 = vor.u32 %v1163_v14, %v1040_v10  ;;  %v1452_v28 = vor.u32 %v1171_v16, %v1072_v15  ;;  %s1336_s10 = smov [#allocation7]  }
  0x19   :  { %v1136_v24 = vld [vmem:[#allocation4 + $0x2c] sm:$0xf]  ;;  %v1187_v25 = vld [vmem:[#allocation4 + $0x38] sm:$0xf0]  ;;  %46 = vperm.xlu0 %1199, %v42_v23   ;;  %v1454_v29 = vor.u32 %v1179_v21, %v1104_v20  ;;  %v1036_v31 = vld [vmem:[#allocation4] sm:$0xf] }
  0x1a   :  { %149 = vmatpush.bf16.msra.mxu0 %v1421_v57  ;;  %227 = vmatpush.bf16.msra.mxu1 %v1425_v58  ;;  %v1162_v32 = vld [vmem:[#allocation4 + $0xc] sm:$0xf0]  ;;  %v1068_v33 = vld [vmem:[#allocation4 + $0x4] sm:$0xf]  ;;  %v1457_v36 = vor.u32 %v1187_v25, %v1136_v24  ;;  %v1170_v37 = vld [vmem:[#allocation4 + $0x10] sm:$0xf0] }
  0x1b   :  { %308 = vmatpush.bf16.msra.mxu2 %v1427_v59  ;;  %v1100_v38 = vld [vmem:[#allocation4 + $0x8] sm:$0xf]  ;;  %v1178_v40 = vld [vmem:[#allocation4 + $0x14] sm:$0xf0]  ;;  %v1132_v41 = vld [vmem:[#allocation4 + $0xc] sm:$0xf]  ;;  %v1460_v43 = vor.u32 %v1162_v32, %v1036_v31  ;;  %v1464_v44 = vor.u32 %v1170_v37, %v1068_v33 }
  0x1c   :  { %388 = vmatpush.bf16.msra.mxu3 %v1430_v63  ;;  %v1186_v42 = vld [vmem:[#allocation4 + $0x18] sm:$0xf0]  ;;  %v1466_v48 = vor.u32 %v1178_v40, %v1100_v38  ;;  %v62_v50 = vld [vmem:[%s1741_s3] sm:$0xf]  ;;  %s1022_s11 = sshll.u32 %s1336_s10, 4  ;;  %s1024_s14 = sshll.u32 %s1744_s6, 4  ;;  %s1023_s11 = int_to_ptr.vmem [resolvable:$true] %s1022_s11  ;;  %s1025_s14 = int_to_ptr.hbm [resolvable:$true] %s1024_s14 }
  0x1d   :  { %v1469_v49 = vor.u32 %v1186_v42, %v1132_v41  ;;  %v64_v56 = vperm.slane %v62_v50, 0  ;;  %v65_v60 = vperm.slane %v62_v50, 1  ;;  %v66_v61 = vperm.slane %v62_v50, 2 }
  0x1e   :  { %150 = vmatpush.bf16.msra.mxu0 %v1433_v7  ;;  %228 = vmatpush.bf16.msra.mxu1 %v1437_v11  ;;  %v67_v62 = vperm.slane %v62_v50, 3  ;;  %vm1015_vm1 = vcmask 0  }
  0x1f   :  { %309 = vmatpush.bf16.msra.mxu2 %v1439_v12 }
  0x20   :  { %389 = vmatpush.bf16.msra.mxu3 %v1442_v19 }
  0x22   :  { %151 = vmatpush.bf16.msra.mxu0 %v1448_v27  ;;  %229 = vmatpush.bf16.msra.mxu1 %v1452_v28 }
  0x23   :  { %310 = vmatpush.bf16.msra.mxu2 %v1454_v29 }
  0x24   :  { %390 = vmatpush.bf16.msra.mxu3 %v1457_v36 }
  0x26   :  { %152 = vmatpush.bf16.msra.mxu0 %v1460_v43  ;;  %230 = vmatpush.bf16.msra.mxu1 %v1464_v44 }
  0x27   :  { %311 = vmatpush.bf16.msra.mxu2 %v1466_v48 }
  0x28   :  { %391 = vmatpush.bf16.msra.mxu3 %v1469_v49 }
  0x29   :  { %153 = vmatmul.bf16.vlgmr.msra.gmra.mxu0 %v1335_v0  ;;  %231 = vmatmul.bf16.vlgmr.msra.gmra.mxu1 %v1335_v0 }
  0x2a   :  { %421 = vmatpush.bf16.msrb.mxu0 %v1376_v4  ;;  %435 = vmatpush.bf16.msrb.mxu1 %v1378_v8 }
  0x2b   :  { %312 = vmatmul.bf16.vlgmr.msra.gmra.mxu2 %v1335_v0  ;;  %392 = vmatmul.bf16.vlgmr.msra.gmra.mxu3 %v1335_v0  ;;  %v43_v0 = vld [vmem:[%s1739_s1] sm:$0xf] }
  0x2c   :  { %452 = vmatpush.bf16.msrb.mxu2 %v1380_v9  ;;  %468 = vmatpush.bf16.msrb.mxu3 %v1383_v13  ;;  %v50_v52 = vperm.slane %v43_v0, 0  ;;  %v51_v53 = vperm.slane %v43_v0, 1  ;;  %v52_v54 = vperm.slane %v43_v0, 2  ;;  %v53_v55 = vperm.slane %v43_v0, 3 }
  0x2e   :  { %422 = vmatpush.bf16.msrb.mxu0 %v1387_v17  ;;  %436 = vmatpush.bf16.msrb.mxu1 %v1389_v18 }
  0x30   :  { %453 = vmatpush.bf16.msrb.mxu2 %v1392_v22  ;;  %469 = vmatpush.bf16.msrb.mxu3 %v1394_v26 }
  0x32   :  { %423 = vmatpush.bf16.msrb.mxu0 %v1397_v30  ;;  %437 = vmatpush.bf16.msrb.mxu1 %v1401_v34 }
  0x34   :  { %454 = vmatpush.bf16.msrb.mxu2 %v1403_v35  ;;  %470 = vmatpush.bf16.msrb.mxu3 %v1406_v39 }
  0x36   :  { %424 = vmatpush.bf16.msrb.mxu0 %v1409_v45  ;;  %438 = vmatpush.bf16.msrb.mxu1 %v1413_v46 }
  0x38   :  { %455 = vmatpush.bf16.msrb.mxu2 %v1415_v47  ;;  %471 = vmatpush.bf16.msrb.mxu3 %v1418_v51 }
  0x3a   :  { %425 = vmatpush.bf16.msrb.mxu0 %v1421_v57  ;;  %439 = vmatpush.bf16.msrb.mxu1 %v1425_v58 }
  0x3c   :  { %456 = vmatpush.bf16.msrb.mxu2 %v1427_v59  ;;  %472 = vmatpush.bf16.msrb.mxu3 %v1430_v63 }
  0x3e   :  { %426 = vmatpush.bf16.msrb.mxu0 %v1433_v7  ;;  %440 = vmatpush.bf16.msrb.mxu1 %v1437_v11 }
  0x40   :  { %457 = vmatpush.bf16.msrb.mxu2 %v1439_v12  ;;  %473 = vmatpush.bf16.msrb.mxu3 %v1442_v19 }
  0x42   :  { %427 = vmatpush.bf16.msrb.mxu0 %v1448_v27  ;;  %441 = vmatpush.bf16.msrb.mxu1 %v1452_v28 }
  0x44   :  { %458 = vmatpush.bf16.msrb.mxu2 %v1454_v29  ;;  %474 = vmatpush.bf16.msrb.mxu3 %v1457_v36 }
  0x46   :  { %428 = vmatpush.bf16.msrb.mxu0 %v1460_v43  ;;  %442 = vmatpush.bf16.msrb.mxu1 %v1464_v44 }
  0x48   :  { %459 = vmatpush.bf16.msrb.mxu2 %v1466_v48  ;;  %475 = vmatpush.bf16.msrb.mxu3 %v1469_v49 }
  0x4a   :  { %505 = vmatpush.bf16.msra.mxu0 %v1376_v4  ;;  %519 = vmatpush.bf16.msra.mxu1 %v1378_v8 }
  0x4c   :  { %536 = vmatpush.bf16.msra.mxu2 %v1380_v9  ;;  %552 = vmatpush.bf16.msra.mxu3 %v1383_v13 }
  0x4e   :  { %506 = vmatpush.bf16.msra.mxu0 %v1387_v17  ;;  %520 = vmatpush.bf16.msra.mxu1 %v1389_v18 }
  0x50   :  { %537 = vmatpush.bf16.msra.mxu2 %v1392_v22  ;;  %553 = vmatpush.bf16.msra.mxu3 %v1394_v26 }
  0x52   :  { %507 = vmatpush.bf16.msra.mxu0 %v1397_v30  ;;  %521 = vmatpush.bf16.msra.mxu1 %v1401_v34 }
  0x54   :  { %538 = vmatpush.bf16.msra.mxu2 %v1403_v35  ;;  %554 = vmatpush.bf16.msra.mxu3 %v1406_v39 }
  0x56   :  { %508 = vmatpush.bf16.msra.mxu0 %v1409_v45  ;;  %522 = vmatpush.bf16.msra.mxu1 %v1413_v46 }
  0x58   :  { %539 = vmatpush.bf16.msra.mxu2 %v1415_v47  ;;  %555 = vmatpush.bf16.msra.mxu3 %v1418_v51 }
  0x5a   :  { %509 = vmatpush.bf16.msra.mxu0 %v1421_v57  ;;  %523 = vmatpush.bf16.msra.mxu1 %v1425_v58 }
  0x5c   :  { %540 = vmatpush.bf16.msra.mxu2 %v1427_v59  ;;  %556 = vmatpush.bf16.msra.mxu3 %v1430_v63 }
  0x5e   :  { %510 = vmatpush.bf16.msra.mxu0 %v1433_v7  ;;  %524 = vmatpush.bf16.msra.mxu1 %v1437_v11 }
  0x60   :  { %541 = vmatpush.bf16.msra.mxu2 %v1439_v12  ;;  %557 = vmatpush.bf16.msra.mxu3 %v1442_v19 }
  0x62   :  { %511 = vmatpush.bf16.msra.mxu0 %v1448_v27  ;;  %525 = vmatpush.bf16.msra.mxu1 %v1452_v28 }
  0x64   :  { %542 = vmatpush.bf16.msra.mxu2 %v1454_v29  ;;  %558 = vmatpush.bf16.msra.mxu3 %v1457_v36 }
  0x66   :  { %512 = vmatpush.bf16.msra.mxu0 %v1460_v43  ;;  %526 = vmatpush.bf16.msra.mxu1 %v1464_v44 }
  0x68   :  { %543 = vmatpush.bf16.msra.mxu2 %v1466_v48  ;;  %559 = vmatpush.bf16.msra.mxu3 %v1469_v49 }
  0x8b   :  { %v47_v1 = vpop.permute.xlu0 %46 }
  0x8c   :  { %v58_v2 = vmul.f32 %v50_v52, %v47_v1  ;;  %v59_v3 = vmul.f32 %v51_v53, %v47_v1  ;;  %v60_v5 = vmul.f32 %v52_v54, %v47_v1  ;;  %v61_v6 = vmul.f32 %v53_v55, %v47_v1 }
  0x8e   :  { %v72_v10 = vadd.f32 %v64_v56, %v58_v2  ;;  %v73_v14 = vadd.f32 %v65_v60, %v59_v3  ;;  %v74_v15 = vadd.f32 %v66_v61, %v60_v5  ;;  %v75_v16 = vadd.f32 %v67_v62, %v61_v6 }
  0x90   :  { %76 = vst [vmem:[#allocation2] sm:$0xff] %v72_v10 }
  0x91   :  { %77 = vst [vmem:[#allocation2 + $0x8] sm:$0xff] %v73_v14 }
  0x92   :  { %78 = vst [vmem:[#allocation2 + $0x10] sm:$0xff] %v74_v15 }
  0x93   :  { %79 = vst [vmem:[#allocation2 + $0x18] sm:$0xff] %v75_v16 }
  0x9a   :  { %v80_v20 = vld [vmem:[#allocation2] ss:$8 sm:$0xf] }
  0x9b   :  { %v237_v21 = vrot.slane %v80_v20, 1  ;;  %v317_v37 = vrot.slane %v80_v20, 2  ;;  %v397_v40 = vrot.slane %v80_v20, 3 }
  0xa6   :  { %v154_v23 = vpop.f32.mrf.mxu0  ;;  %v232_v25 = vpop.f32.mrf.mxu1 }
  0xa7   :  { %v158_v24 = vadd.f32 %v154_v23, %v80_v20  ;;  %v239_v31 = vadd.f32 %v237_v21, %v232_v25 }
  0xa9   :  { %v400_v32 = vmul.f32 0.5, %v158_v24  ;;  %v404_v33 = vmul.f32 0.5, %v239_v31  ;;  %v419_v24 = vld [vmem:[#allocation2 + $0x1] ss:$8 sm:$0xf] }
  0xaa   :  { %v449_v25 = vrot.slane %v419_v24, 1 }
  0xab   :  { %1200 = vtanh.f32 %v400_v32 }
  0xac   :  { %1202 = vtanh.f32 %v404_v33 }
  0xae   :  { %v313_v38 = vpop.f32.mrf.mxu2  ;;  %v393_v42 = vpop.f32.mrf.mxu3 }
  0xaf   :  { %v319_v41 = vadd.f32 %v317_v37, %v313_v38  ;;  %v156_v0 = vpop.f32.mrf.mxu0  ;;  %v399_v50 = vadd.f32 %v397_v40, %v393_v42  ;;  %v234_v52 = vpop.f32.mrf.mxu1  ;;  %v481_v42 = vrot.slane %v419_v24, 3 }
  0xb1   :  { %1204 = vtanh.f32 %v319_v41  ;;  %v1201_v53 = vpop.eup %1200  ;;  %v409_v54 = vmul.f32 0.5, %v399_v50  ;;  %v465_v41 = vrot.slane %v419_v24, 2 }
  0xb2   :  { %v1203_v55 = vpop.eup %1202  ;;  %v402_v56 = vmul.f32 0.5, %v1201_v53 }
  0xb3   :  { %v406_v60 = vmul.f32 0.5, %v1203_v55  ;;  %1206 = vtanh.f32 %v409_v54 }
  0xb4   :  { %v403_v61 = vadd.f32 0.5, %v402_v56 }
  0xb5   :  { %v407_v62 = vadd.f32 0.5, %v406_v60 }
  0xb6   :  { %v315_v1 = vpop.f32.mrf.mxu2  ;;  %v395_v3 = vpop.f32.mrf.mxu3 }
  0xb7   :  { %v1205_v2 = vpop.eup %1204  ;;  %v413_v5 = vmul.f32 0.0, %v407_v62 }
  0xb8   :  { %v414_v6 = vmul.f32 %v1205_v2, %v403_v61 }
  0xb9   :  { %v1207_v10 = vpop.eup %1206 }
  0xba   :  { %v1549_v14 = vadd.f32 %v414_v6, %v413_v5  ;;  %v411_v15 = vmul.f32 0.5, %v1207_v10 }
  0xbc   :  { %1208 = vtanh.f32 %v1549_v14  ;;  %v412_v16 = vadd.f32 0.5, %v411_v15 }
  0xc2   :  { %v1209_v20 = vpop.eup %1208 }
  0xc3   :  { %v417_v21 = vmul.f32 %v1209_v20, %v412_v16 }
  0xc5   :  { %v420_v23 = vpack.c.bf16 %v417_v21, %v417_v21 }
  0xc7   :  { %429 = vmatmul.bf16.vlgmr.msrb.gmra.mxu0 %v420_v23  ;;  %443 = vmatmul.bf16.vlgmr.msrb.gmra.mxu1 %v420_v23 }
  0xc8   :  { %460 = vmatmul.bf16.vlgmr.msrb.gmra.mxu2 %v420_v23  ;;  %476 = vmatmul.bf16.vlgmr.msrb.gmra.mxu3 %v420_v23 }
  0xc9   :  { %589 = vmatpush.bf16.msrb.mxu0 %v1376_v4  ;;  %603 = vmatpush.bf16.msrb.mxu1 %v1378_v8 }
  0xca   :  { %620 = vmatpush.bf16.msrb.mxu2 %v1380_v9  ;;  %636 = vmatpush.bf16.msrb.mxu3 %v1383_v13 }
  0xcd   :  { %590 = vmatpush.bf16.msrb.mxu0 %v1387_v17  ;;  %604 = vmatpush.bf16.msrb.mxu1 %v1389_v18 }
  0xce   :  { %621 = vmatpush.bf16.msrb.mxu2 %v1392_v22  ;;  %637 = vmatpush.bf16.msrb.mxu3 %v1394_v26 }
  0xd1   :  { %591 = vmatpush.bf16.msrb.mxu0 %v1397_v30  ;;  %605 = vmatpush.bf16.msrb.mxu1 %v1401_v34 }
  0xd2   :  { %622 = vmatpush.bf16.msrb.mxu2 %v1403_v35  ;;  %638 = vmatpush.bf16.msrb.mxu3 %v1406_v39 }
  0xd5   :  { %592 = vmatpush.bf16.msrb.mxu0 %v1409_v45  ;;  %606 = vmatpush.bf16.msrb.mxu1 %v1413_v46 }
  0xd6   :  { %623 = vmatpush.bf16.msrb.mxu2 %v1415_v47  ;;  %639 = vmatpush.bf16.msrb.mxu3 %v1418_v51 }
  0xd9   :  { %593 = vmatpush.bf16.msrb.mxu0 %v1421_v57  ;;  %607 = vmatpush.bf16.msrb.mxu1 %v1425_v58 }
  0xda   :  { %624 = vmatpush.bf16.msrb.mxu2 %v1427_v59  ;;  %640 = vmatpush.bf16.msrb.mxu3 %v1430_v63 }
  0xdd   :  { %594 = vmatpush.bf16.msrb.mxu0 %v1433_v7  ;;  %608 = vmatpush.bf16.msrb.mxu1 %v1437_v11 }
  0xde   :  { %625 = vmatpush.bf16.msrb.mxu2 %v1439_v12  ;;  %641 = vmatpush.bf16.msrb.mxu3 %v1442_v19 }
  0xe1   :  { %595 = vmatpush.bf16.msrb.mxu0 %v1448_v27  ;;  %609 = vmatpush.bf16.msrb.mxu1 %v1452_v28 }
  0xe2   :  { %626 = vmatpush.bf16.msrb.mxu2 %v1454_v29  ;;  %642 = vmatpush.bf16.msrb.mxu3 %v1457_v36 }
  0xe5   :  { %596 = vmatpush.bf16.msrb.mxu0 %v1460_v43  ;;  %610 = vmatpush.bf16.msrb.mxu1 %v1464_v44 }
  0xe6   :  { %627 = vmatpush.bf16.msrb.mxu2 %v1466_v48  ;;  %643 = vmatpush.bf16.msrb.mxu3 %v1469_v49 }
 0x144   :  { %v430_v31 = vpop.f32.mrf.mxu0  ;;  %v444_v32 = vpop.f32.mrf.mxu1 }
 0x145   :  { %v434_v33 = vadd.f32 %v430_v31, %v419_v24  ;;  %v451_v37 = vadd.f32 %v449_v25, %v444_v32 }
 0x147   :  { %v484_v38 = vmul.f32 0.5, %v434_v33  ;;  %v488_v40 = vmul.f32 0.5, %v451_v37 }
 0x149   :  { %1210 = vtanh.f32 %v484_v38 }
 0x14a   :  { %1212 = vtanh.f32 %v488_v40 }
 0x14b   :  { %v461_v0 = vpop.f32.mrf.mxu2  ;;  %v477_v50 = vpop.f32.mrf.mxu3 }
 0x14c   :  { %v467_v52 = vadd.f32 %v465_v41, %v461_v0  ;;  %v483_v53 = vadd.f32 %v481_v42, %v477_v50  ;;  %v432_v54 = vpop.f32.mrf.mxu0  ;;  %v446_v55 = vpop.f32.mrf.mxu1 }
 0x14e   :  { %1214 = vtanh.f32 %v467_v52  ;;  %v493_v56 = vmul.f32 0.5, %v483_v53 }
 0x14f   :  { %v1211_v60 = vpop.eup %1210 }
 0x150   :  { %v1213_v61 = vpop.eup %1212  ;;  %v486_v62 = vmul.f32 0.5, %v1211_v60  ;;  %1216 = vtanh.f32 %v493_v56 }
 0x151   :  { %v490_v1 = vmul.f32 0.5, %v1213_v61 }
 0x152   :  { %v487_v2 = vadd.f32 0.5, %v486_v62 }
 0x153   :  { %v491_v3 = vadd.f32 0.5, %v490_v1  ;;  %v463_v5 = vpop.f32.mrf.mxu2  ;;  %v479_v6 = vpop.f32.mrf.mxu3 }
 0x154   :  { %v1215_v10 = vpop.eup %1214 }
 0x155   :  { %v497_v15 = vmul.f32 %v491_v3, %v1549_v14  ;;  %v498_v16 = vmul.f32 %v1215_v10, %v487_v2  ;;  %v503_v14 = vld [vmem:[#allocation2 + $0x2] ss:$8 sm:$0xf] }
 0x156   :  { %v1217_v20 = vpop.eup %1216  ;;  %v533_v33 = vrot.slane %v503_v14, 1  ;;  %v549_v50 = vrot.slane %v503_v14, 2  ;;  %v565_v52 = vrot.slane %v503_v14, 3 }
 0x157   :  { %v1585_v21 = vadd.f32 %v498_v16, %v497_v15  ;;  %v495_v23 = vmul.f32 0.5, %v1217_v20 }
 0x159   :  { %1218 = vtanh.f32 %v1585_v21  ;;  %v496_v24 = vadd.f32 0.5, %v495_v23 }
 0x15f   :  { %v1219_v25 = vpop.eup %1218 }
 0x160   :  { %v501_v31 = vmul.f32 %v1219_v25, %v496_v24 }
 0x162   :  { %v504_v32 = vpack.c.bf16 %v501_v31, %v501_v31 }
 0x164   :  { %513 = vmatmul.bf16.vlgmr.msra.gmra.mxu0 %v504_v32  ;;  %527 = vmatmul.bf16.vlgmr.msra.gmra.mxu1 %v504_v32 }
 0x165   :  { %544 = vmatmul.bf16.vlgmr.msra.gmra.mxu2 %v504_v32  ;;  %560 = vmatmul.bf16.vlgmr.msra.gmra.mxu3 %v504_v32 }
 0x166   :  { %673 = vmatpush.bf16.msra.mxu0 %v1376_v4  ;;  %687 = vmatpush.bf16.msra.mxu1 %v1378_v8 }
 0x167   :  { %704 = vmatpush.bf16.msra.mxu2 %v1380_v9  ;;  %720 = vmatpush.bf16.msra.mxu3 %v1383_v13 }
 0x16a   :  { %674 = vmatpush.bf16.msra.mxu0 %v1387_v17  ;;  %688 = vmatpush.bf16.msra.mxu1 %v1389_v18 }
 0x16b   :  { %705 = vmatpush.bf16.msra.mxu2 %v1392_v22  ;;  %721 = vmatpush.bf16.msra.mxu3 %v1394_v26 }
 0x16e   :  { %675 = vmatpush.bf16.msra.mxu0 %v1397_v30  ;;  %689 = vmatpush.bf16.msra.mxu1 %v1401_v34 }
 0x16f   :  { %706 = vmatpush.bf16.msra.mxu2 %v1403_v35  ;;  %722 = vmatpush.bf16.msra.mxu3 %v1406_v39 }
 0x172   :  { %676 = vmatpush.bf16.msra.mxu0 %v1409_v45  ;;  %690 = vmatpush.bf16.msra.mxu1 %v1413_v46 }
 0x173   :  { %707 = vmatpush.bf16.msra.mxu2 %v1415_v47  ;;  %723 = vmatpush.bf16.msra.mxu3 %v1418_v51 }
 0x176   :  { %677 = vmatpush.bf16.msra.mxu0 %v1421_v57  ;;  %691 = vmatpush.bf16.msra.mxu1 %v1425_v58 }
 0x177   :  { %708 = vmatpush.bf16.msra.mxu2 %v1427_v59  ;;  %724 = vmatpush.bf16.msra.mxu3 %v1430_v63 }
 0x17a   :  { %678 = vmatpush.bf16.msra.mxu0 %v1433_v7  ;;  %692 = vmatpush.bf16.msra.mxu1 %v1437_v11 }
 0x17b   :  { %709 = vmatpush.bf16.msra.mxu2 %v1439_v12  ;;  %725 = vmatpush.bf16.msra.mxu3 %v1442_v19 }
 0x17e   :  { %679 = vmatpush.bf16.msra.mxu0 %v1448_v27  ;;  %693 = vmatpush.bf16.msra.mxu1 %v1452_v28 }
 0x17f   :  { %710 = vmatpush.bf16.msra.mxu2 %v1454_v29  ;;  %726 = vmatpush.bf16.msra.mxu3 %v1457_v36 }
 0x182   :  { %680 = vmatpush.bf16.msra.mxu0 %v1460_v43  ;;  %694 = vmatpush.bf16.msra.mxu1 %v1464_v44 }
 0x183   :  { %711 = vmatpush.bf16.msra.mxu2 %v1466_v48  ;;  %727 = vmatpush.bf16.msra.mxu3 %v1469_v49 }
 0x1e1   :  { %v514_v37 = vpop.f32.mrf.mxu0  ;;  %v528_v38 = vpop.f32.mrf.mxu1 }
 0x1e2   :  { %v518_v40 = vadd.f32 %v514_v37, %v503_v14  ;;  %v535_v41 = vadd.f32 %v533_v33, %v528_v38 }
 0x1e4   :  { %v568_v42 = vmul.f32 0.5, %v518_v40  ;;  %v572_v0 = vmul.f32 0.5, %v535_v41 }
 0x1e6   :  { %1220 = vtanh.f32 %v568_v42 }
 0x1e7   :  { %1222 = vtanh.f32 %v572_v0 }
 0x1e8   :  { %v545_v53 = vpop.f32.mrf.mxu2  ;;  %v561_v54 = vpop.f32.mrf.mxu3 }
 0x1e9   :  { %v551_v55 = vadd.f32 %v549_v50, %v545_v53  ;;  %v567_v56 = vadd.f32 %v565_v52, %v561_v54  ;;  %v516_v60 = vpop.f32.mrf.mxu0  ;;  %v530_v61 = vpop.f32.mrf.mxu1 }
 0x1eb   :  { %1224 = vtanh.f32 %v551_v55  ;;  %v577_v62 = vmul.f32 0.5, %v567_v56 }
 0x1ec   :  { %v1221_v1 = vpop.eup %1220 }
 0x1ed   :  { %v1223_v2 = vpop.eup %1222  ;;  %v570_v3 = vmul.f32 0.5, %v1221_v1  ;;  %1226 = vtanh.f32 %v577_v62 }
 0x1ee   :  { %v574_v5 = vmul.f32 0.5, %v1223_v2 }
 0x1ef   :  { %v571_v6 = vadd.f32 0.5, %v570_v3 }
 0x1f0   :  { %v575_v10 = vadd.f32 0.5, %v574_v5  ;;  %v547_v15 = vpop.f32.mrf.mxu2  ;;  %v563_v16 = vpop.f32.mrf.mxu3 }
 0x1f1   :  { %v1225_v20 = vpop.eup %1224 }
 0x1f2   :  { %v581_v23 = vmul.f32 %v575_v10, %v1585_v21  ;;  %v582_v24 = vmul.f32 %v1225_v20, %v571_v6  ;;  %v587_v21 = vld [vmem:[#allocation2 + $0x3] ss:$8 sm:$0xf] }
 0x1f3   :  { %v1227_v25 = vpop.eup %1226  ;;  %v617_v40 = vrot.slane %v587_v21, 1  ;;  %v633_v54 = vrot.slane %v587_v21, 2  ;;  %v649_v55 = vrot.slane %v587_v21, 3 }
 0x1f4   :  { %v1621_v31 = vadd.f32 %v582_v24, %v581_v23  ;;  %v579_v32 = vmul.f32 0.5, %v1227_v25 }
 0x1f6   :  { %1228 = vtanh.f32 %v1621_v31  ;;  %v580_v14 = vadd.f32 0.5, %v579_v32 }
 0x1fc   :  { %v1229_v33 = vpop.eup %1228 }
 0x1fd   :  { %v585_v37 = vmul.f32 %v1229_v33, %v580_v14 }
 0x1ff   :  { %v588_v38 = vpack.c.bf16 %v585_v37, %v585_v37 }
 0x201   :  { %597 = vmatmul.bf16.vlgmr.msrb.gmra.mxu0 %v588_v38  ;;  %611 = vmatmul.bf16.vlgmr.msrb.gmra.mxu1 %v588_v38 }
 0x202   :  { %628 = vmatmul.bf16.vlgmr.msrb.gmra.mxu2 %v588_v38  ;;  %644 = vmatmul.bf16.vlgmr.msrb.gmra.mxu3 %v588_v38 }
 0x203   :  { %757 = vmatpush.bf16.msrb.mxu0 %v1376_v4  ;;  %771 = vmatpush.bf16.msrb.mxu1 %v1378_v8 }
 0x204   :  { %788 = vmatpush.bf16.msrb.mxu2 %v1380_v9  ;;  %804 = vmatpush.bf16.msrb.mxu3 %v1383_v13 }
 0x207   :  { %758 = vmatpush.bf16.msrb.mxu0 %v1387_v17  ;;  %772 = vmatpush.bf16.msrb.mxu1 %v1389_v18 }
 0x208   :  { %789 = vmatpush.bf16.msrb.mxu2 %v1392_v22  ;;  %805 = vmatpush.bf16.msrb.mxu3 %v1394_v26 }
 0x20b   :  { %759 = vmatpush.bf16.msrb.mxu0 %v1397_v30  ;;  %773 = vmatpush.bf16.msrb.mxu1 %v1401_v34 }
 0x20c   :  { %790 = vmatpush.bf16.msrb.mxu2 %v1403_v35  ;;  %806 = vmatpush.bf16.msrb.mxu3 %v1406_v39 }
 0x20f   :  { %760 = vmatpush.bf16.msrb.mxu0 %v1409_v45  ;;  %774 = vmatpush.bf16.msrb.mxu1 %v1413_v46 }
 0x210   :  { %791 = vmatpush.bf16.msrb.mxu2 %v1415_v47  ;;  %807 = vmatpush.bf16.msrb.mxu3 %v1418_v51 }
 0x213   :  { %761 = vmatpush.bf16.msrb.mxu0 %v1421_v57  ;;  %775 = vmatpush.bf16.msrb.mxu1 %v1425_v58 }
 0x214   :  { %792 = vmatpush.bf16.msrb.mxu2 %v1427_v59  ;;  %808 = vmatpush.bf16.msrb.mxu3 %v1430_v63 }
 0x217   :  { %762 = vmatpush.bf16.msrb.mxu0 %v1433_v7  ;;  %776 = vmatpush.bf16.msrb.mxu1 %v1437_v11 }
 0x218   :  { %793 = vmatpush.bf16.msrb.mxu2 %v1439_v12  ;;  %809 = vmatpush.bf16.msrb.mxu3 %v1442_v19 }
 0x21b   :  { %763 = vmatpush.bf16.msrb.mxu0 %v1448_v27  ;;  %777 = vmatpush.bf16.msrb.mxu1 %v1452_v28 }
 0x21c   :  { %794 = vmatpush.bf16.msrb.mxu2 %v1454_v29  ;;  %810 = vmatpush.bf16.msrb.mxu3 %v1457_v36 }
 0x21f   :  { %764 = vmatpush.bf16.msrb.mxu0 %v1460_v43  ;;  %778 = vmatpush.bf16.msrb.mxu1 %v1464_v44 }
 0x220   :  { %795 = vmatpush.bf16.msrb.mxu2 %v1466_v48  ;;  %811 = vmatpush.bf16.msrb.mxu3 %v1469_v49 }
 0x27e   :  { %v598_v41 = vpop.f32.mrf.mxu0  ;;  %v612_v42 = vpop.f32.mrf.mxu1 }
 0x27f   :  { %v602_v0 = vadd.f32 %v598_v41, %v587_v21  ;;  %v619_v50 = vadd.f32 %v617_v40, %v612_v42 }
 0x281   :  { %v652_v52 = vmul.f32 0.5, %v602_v0  ;;  %v656_v53 = vmul.f32 0.5, %v619_v50 }
 0x283   :  { %1230 = vtanh.f32 %v652_v52 }
 0x284   :  { %1232 = vtanh.f32 %v656_v53 }
 0x285   :  { %v629_v56 = vpop.f32.mrf.mxu2  ;;  %v645_v60 = vpop.f32.mrf.mxu3 }
 0x286   :  { %v635_v61 = vadd.f32 %v633_v54, %v629_v56  ;;  %v651_v62 = vadd.f32 %v649_v55, %v645_v60  ;;  %v600_v1 = vpop.f32.mrf.mxu0  ;;  %v614_v2 = vpop.f32.mrf.mxu1 }
 0x288   :  { %1234 = vtanh.f32 %v635_v61  ;;  %v661_v3 = vmul.f32 0.5, %v651_v62 }
 0x289   :  { %v1231_v5 = vpop.eup %1230 }
 0x28a   :  { %v1233_v6 = vpop.eup %1232  ;;  %v654_v10 = vmul.f32 0.5, %v1231_v5  ;;  %1236 = vtanh.f32 %v661_v3 }
 0x28b   :  { %v658_v15 = vmul.f32 0.5, %v1233_v6 }
 0x28c   :  { %v655_v16 = vadd.f32 0.5, %v654_v10 }
 0x28d   :  { %v659_v20 = vadd.f32 0.5, %v658_v15  ;;  %v631_v23 = vpop.f32.mrf.mxu2  ;;  %v647_v24 = vpop.f32.mrf.mxu3 }
 0x28e   :  { %v1235_v25 = vpop.eup %1234 }
 0x28f   :  { %v665_v32 = vmul.f32 %v659_v20, %v1621_v31  ;;  %v666_v14 = vmul.f32 %v1235_v25, %v655_v16  ;;  %v671_v31 = vld [vmem:[#allocation2 + $0x4] ss:$8 sm:$0xf] }
 0x290   :  { %v1237_v33 = vpop.eup %1236  ;;  %v701_v0 = vrot.slane %v671_v31, 1  ;;  %v717_v60 = vrot.slane %v671_v31, 2  ;;  %v733_v61 = vrot.slane %v671_v31, 3 }
 0x291   :  { %v1657_v37 = vadd.f32 %v666_v14, %v665_v32  ;;  %v663_v38 = vmul.f32 0.5, %v1237_v33 }
 0x293   :  { %1238 = vtanh.f32 %v1657_v37  ;;  %v664_v21 = vadd.f32 0.5, %v663_v38 }
 0x299   :  { %v1239_v40 = vpop.eup %1238 }
 0x29a   :  { %v669_v41 = vmul.f32 %v1239_v40, %v664_v21 }
 0x29c   :  { %v672_v42 = vpack.c.bf16 %v669_v41, %v669_v41 }
 0x29e   :  { %681 = vmatmul.bf16.vlgmr.msra.gmra.mxu0 %v672_v42  ;;  %695 = vmatmul.bf16.vlgmr.msra.gmra.mxu1 %v672_v42 }
 0x29f   :  { %712 = vmatmul.bf16.vlgmr.msra.gmra.mxu2 %v672_v42  ;;  %728 = vmatmul.bf16.vlgmr.msra.gmra.mxu3 %v672_v42 }
 0x2a0   :  { %841 = vmatpush.bf16.msra.mxu0 %v1376_v4  ;;  %855 = vmatpush.bf16.msra.mxu1 %v1378_v8 }
 0x2a1   :  { %872 = vmatpush.bf16.msra.mxu2 %v1380_v9  ;;  %888 = vmatpush.bf16.msra.mxu3 %v1383_v13 }
 0x2a4   :  { %842 = vmatpush.bf16.msra.mxu0 %v1387_v17  ;;  %856 = vmatpush.bf16.msra.mxu1 %v1389_v18 }
 0x2a5   :  { %873 = vmatpush.bf16.msra.mxu2 %v1392_v22  ;;  %889 = vmatpush.bf16.msra.mxu3 %v1394_v26 }
 0x2a8   :  { %843 = vmatpush.bf16.msra.mxu0 %v1397_v30  ;;  %857 = vmatpush.bf16.msra.mxu1 %v1401_v34 }
 0x2a9   :  { %874 = vmatpush.bf16.msra.mxu2 %v1403_v35  ;;  %890 = vmatpush.bf16.msra.mxu3 %v1406_v39 }
 0x2ac   :  { %844 = vmatpush.bf16.msra.mxu0 %v1409_v45  ;;  %858 = vmatpush.bf16.msra.mxu1 %v1413_v46 }
 0x2ad   :  { %875 = vmatpush.bf16.msra.mxu2 %v1415_v47  ;;  %891 = vmatpush.bf16.msra.mxu3 %v1418_v51 }
 0x2b0   :  { %845 = vmatpush.bf16.msra.mxu0 %v1421_v57  ;;  %859 = vmatpush.bf16.msra.mxu1 %v1425_v58 }
 0x2b1   :  { %876 = vmatpush.bf16.msra.mxu2 %v1427_v59  ;;  %892 = vmatpush.bf16.msra.mxu3 %v1430_v63 }
 0x2b4   :  { %846 = vmatpush.bf16.msra.mxu0 %v1433_v7  ;;  %860 = vmatpush.bf16.msra.mxu1 %v1437_v11 }
 0x2b5   :  { %877 = vmatpush.bf16.msra.mxu2 %v1439_v12  ;;  %893 = vmatpush.bf16.msra.mxu3 %v1442_v19 }
 0x2b8   :  { %847 = vmatpush.bf16.msra.mxu0 %v1448_v27  ;;  %861 = vmatpush.bf16.msra.mxu1 %v1452_v28 }
 0x2b9   :  { %878 = vmatpush.bf16.msra.mxu2 %v1454_v29  ;;  %894 = vmatpush.bf16.msra.mxu3 %v1457_v36 }
 0x2bc   :  { %848 = vmatpush.bf16.msra.mxu0 %v1460_v43  ;;  %862 = vmatpush.bf16.msra.mxu1 %v1464_v44 }
 0x2bd   :  { %879 = vmatpush.bf16.msra.mxu2 %v1466_v48  ;;  %895 = vmatpush.bf16.msra.mxu3 %v1469_v49 }
 0x31b   :  { %v682_v50 = vpop.f32.mrf.mxu0  ;;  %v696_v52 = vpop.f32.mrf.mxu1 }
 0x31c   :  { %v686_v53 = vadd.f32 %v682_v50, %v671_v31  ;;  %v703_v54 = vadd.f32 %v701_v0, %v696_v52 }
 0x31e   :  { %v736_v55 = vmul.f32 0.5, %v686_v53  ;;  %v740_v56 = vmul.f32 0.5, %v703_v54 }
 0x320   :  { %1240 = vtanh.f32 %v736_v55  ;;  %v839_v55 = vld [vmem:[#allocation2 + $0x6] ss:$8 sm:$0xf] }
 0x321   :  { %1242 = vtanh.f32 %v740_v56  ;;  %v869_v56 = vrot.slane %v839_v55, 1 }
 0x322   :  { %v713_v62 = vpop.f32.mrf.mxu2  ;;  %v729_v1 = vpop.f32.mrf.mxu3 }
 0x323   :  { %v719_v2 = vadd.f32 %v717_v60, %v713_v62  ;;  %v735_v3 = vadd.f32 %v733_v61, %v729_v1  ;;  %v684_v5 = vpop.f32.mrf.mxu0  ;;  %v698_v6 = vpop.f32.mrf.mxu1 }
 0x324   :  { %v885_v5 = vrot.slane %v839_v55, 2  ;;  %v901_v6 = vrot.slane %v839_v55, 3 }
 0x325   :  { %1244 = vtanh.f32 %v719_v2  ;;  %v745_v10 = vmul.f32 0.5, %v735_v3 }
 0x326   :  { %v1241_v15 = vpop.eup %1240 }
 0x327   :  { %v1243_v16 = vpop.eup %1242  ;;  %v738_v20 = vmul.f32 0.5, %v1241_v15  ;;  %1246 = vtanh.f32 %v745_v10 }
 0x328   :  { %v742_v23 = vmul.f32 0.5, %v1243_v16 }
 0x329   :  { %v739_v24 = vadd.f32 0.5, %v738_v20 }
 0x32a   :  { %v743_v25 = vadd.f32 0.5, %v742_v23  ;;  %v715_v32 = vpop.f32.mrf.mxu2  ;;  %v731_v14 = vpop.f32.mrf.mxu3 }
 0x32b   :  { %v1245_v33 = vpop.eup %1244 }
 0x32c   :  { %v749_v38 = vmul.f32 %v743_v25, %v1657_v37  ;;  %v750_v21 = vmul.f32 %v1245_v33, %v739_v24 }
 0x32d   :  { %v1247_v40 = vpop.eup %1246 }
 0x32e   :  { %v1693_v41 = vadd.f32 %v750_v21, %v749_v38  ;;  %v747_v42 = vmul.f32 0.5, %v1247_v40 }
 0x330   :  { %1248 = vtanh.f32 %v1693_v41  ;;  %v748_v31 = vadd.f32 0.5, %v747_v42 }
 0x336   :  { %v1249_v0 = vpop.eup %1248 }
 0x337   :  { %v753_v50 = vmul.f32 %v1249_v0, %v748_v31 }
 0x339   :  { %v756_v52 = vpack.c.bf16 %v753_v50, %v753_v50 }
 0x33b   :  { %765 = vmatmul.bf16.vlgmr.msrb.gmra.mxu0 %v756_v52  ;;  %779 = vmatmul.bf16.vlgmr.msrb.gmra.mxu1 %v756_v52 }
 0x33c   :  { %796 = vmatmul.bf16.vlgmr.msrb.gmra.mxu2 %v756_v52  ;;  %812 = vmatmul.bf16.vlgmr.msrb.gmra.mxu3 %v756_v52 }
 0x33d   :  { %925 = vmatpush.bf16.msrb.mxu0 %v1376_v4  ;;  %939 = vmatpush.bf16.msrb.mxu1 %v1378_v8  ;;  %v755_v4 = vld [vmem:[#allocation2 + $0x5] ss:$8 sm:$0xf] }
 0x33e   :  { %956 = vmatpush.bf16.msrb.mxu2 %v1380_v9  ;;  %972 = vmatpush.bf16.msrb.mxu3 %v1383_v13  ;;  %v785_v8 = vrot.slane %v755_v4, 1 }
 0x341   :  { %926 = vmatpush.bf16.msrb.mxu0 %v1387_v17  ;;  %940 = vmatpush.bf16.msrb.mxu1 %v1389_v18 }
 0x342   :  { %957 = vmatpush.bf16.msrb.mxu2 %v1392_v22  ;;  %973 = vmatpush.bf16.msrb.mxu3 %v1394_v26 }
 0x345   :  { %927 = vmatpush.bf16.msrb.mxu0 %v1397_v30  ;;  %941 = vmatpush.bf16.msrb.mxu1 %v1401_v34  ;;  %v801_v30 = vrot.slane %v755_v4, 2  ;;  %v817_v34 = vrot.slane %v755_v4, 3 }
 0x346   :  { %958 = vmatpush.bf16.msrb.mxu2 %v1403_v35  ;;  %974 = vmatpush.bf16.msrb.mxu3 %v1406_v39 }
 0x349   :  { %928 = vmatpush.bf16.msrb.mxu0 %v1409_v45  ;;  %942 = vmatpush.bf16.msrb.mxu1 %v1413_v46 }
 0x34a   :  { %959 = vmatpush.bf16.msrb.mxu2 %v1415_v47  ;;  %975 = vmatpush.bf16.msrb.mxu3 %v1418_v51 }
 0x34d   :  { %929 = vmatpush.bf16.msrb.mxu0 %v1421_v57  ;;  %943 = vmatpush.bf16.msrb.mxu1 %v1425_v58 }
 0x34e   :  { %960 = vmatpush.bf16.msrb.mxu2 %v1427_v59  ;;  %976 = vmatpush.bf16.msrb.mxu3 %v1430_v63 }
 0x351   :  { %930 = vmatpush.bf16.msrb.mxu0 %v1433_v7  ;;  %944 = vmatpush.bf16.msrb.mxu1 %v1437_v11 }
 0x352   :  { %961 = vmatpush.bf16.msrb.mxu2 %v1439_v12  ;;  %977 = vmatpush.bf16.msrb.mxu3 %v1442_v19 }
 0x355   :  { %931 = vmatpush.bf16.msrb.mxu0 %v1448_v27  ;;  %945 = vmatpush.bf16.msrb.mxu1 %v1452_v28 }
 0x356   :  { %962 = vmatpush.bf16.msrb.mxu2 %v1454_v29  ;;  %978 = vmatpush.bf16.msrb.mxu3 %v1457_v36 }
 0x359   :  { %932 = vmatpush.bf16.msrb.mxu0 %v1460_v43  ;;  %946 = vmatpush.bf16.msrb.mxu1 %v1464_v44 }
 0x35a   :  { %963 = vmatpush.bf16.msrb.mxu2 %v1466_v48  ;;  %979 = vmatpush.bf16.msrb.mxu3 %v1469_v49 }
 0x3b8   :  { %v766_v9 = vpop.f32.mrf.mxu0  ;;  %v780_v13 = vpop.f32.mrf.mxu1 }
 0x3b9   :  { %v770_v17 = vadd.f32 %v766_v9, %v755_v4  ;;  %v787_v18 = vadd.f32 %v785_v8, %v780_v13 }
 0x3bb   :  { %v820_v22 = vmul.f32 0.5, %v770_v17  ;;  %v824_v26 = vmul.f32 0.5, %v787_v18 }
 0x3bd   :  { %1250 = vtanh.f32 %v820_v22  ;;  %v923_v22 = vld [vmem:[#allocation2 + $0x7] ss:$8 sm:$0xf] }
 0x3be   :  { %1252 = vtanh.f32 %v824_v26  ;;  %v953_v26 = vrot.slane %v923_v22, 1 }
 0x3bf   :  { %v797_v35 = vpop.f32.mrf.mxu2  ;;  %v813_v39 = vpop.f32.mrf.mxu3 }
 0x3c0   :  { %v803_v45 = vadd.f32 %v801_v30, %v797_v35  ;;  %v819_v46 = vadd.f32 %v817_v34, %v813_v39  ;;  %v768_v47 = vpop.f32.mrf.mxu0  ;;  %v782_v51 = vpop.f32.mrf.mxu1 }
 0x3c1   :  { %v969_v47 = vrot.slane %v923_v22, 2  ;;  %v985_v51 = vrot.slane %v923_v22, 3 }
 0x3c2   :  { %1254 = vtanh.f32 %v803_v45  ;;  %v829_v57 = vmul.f32 0.5, %v819_v46 }
 0x3c3   :  { %v1251_v58 = vpop.eup %1250 }
 0x3c4   :  { %v1253_v59 = vpop.eup %1252  ;;  %v822_v63 = vmul.f32 0.5, %v1251_v58  ;;  %1256 = vtanh.f32 %v829_v57 }
 0x3c5   :  { %v826_v7 = vmul.f32 0.5, %v1253_v59 }
 0x3c6   :  { %v823_v11 = vadd.f32 0.5, %v822_v63 }
 0x3c7   :  { %v827_v12 = vadd.f32 0.5, %v826_v7  ;;  %v799_v19 = vpop.f32.mrf.mxu2  ;;  %v815_v27 = vpop.f32.mrf.mxu3 }
 0x3c8   :  { %v1255_v28 = vpop.eup %1254 }
 0x3c9   :  { %v833_v29 = vmul.f32 %v827_v12, %v1693_v41  ;;  %v834_v36 = vmul.f32 %v1255_v28, %v823_v11 }
 0x3ca   :  { %v1257_v43 = vpop.eup %1256 }
 0x3cb   :  { %v835_v44 = vadd.f32 %v834_v36, %v833_v29  ;;  %v831_v48 = vmul.f32 0.5, %v1257_v43 }
 0x3cd   :  { %1258 = vtanh.f32 %v835_v44  ;;  %v832_v49 = vadd.f32 0.5, %v831_v48 }
 0x3d3   :  { %v1259_v37 = vpop.eup %1258 }
 0x3d4   :  { %v837_v53 = vmul.f32 %v1259_v37, %v832_v49 }
 0x3d6   :  { %v840_v54 = vpack.c.bf16 %v837_v53, %v837_v53 }
 0x3d8   :  { %849 = vmatmul.bf16.vlgmr.msra.gmra.mxu0 %v840_v54  ;;  %863 = vmatmul.bf16.vlgmr.msra.gmra.mxu1 %v840_v54 }
 0x3d9   :  { %880 = vmatmul.bf16.vlgmr.msra.gmra.mxu2 %v840_v54  ;;  %896 = vmatmul.bf16.vlgmr.msra.gmra.mxu3 %v840_v54 }
 0x455   :  { %v850_v60 = vpop.f32.mrf.mxu0  ;;  %v864_v61 = vpop.f32.mrf.mxu1 }
 0x456   :  { %v854_v62 = vadd.f32 %v850_v60, %v839_v55  ;;  %v871_v1 = vadd.f32 %v869_v56, %v864_v61 }
 0x458   :  { %v904_v2 = vmul.f32 0.5, %v854_v62  ;;  %v908_v3 = vmul.f32 0.5, %v871_v1  ;;  %v1006_v62 = vld [vmem:[%s1742_s4] sm:$0x1] }
 0x45a   :  { %1260 = vtanh.f32 %v904_v2 }
 0x45b   :  { %1262 = vtanh.f32 %v908_v3 }
 0x45c   :  { %v881_v10 = vpop.f32.mrf.mxu2  ;;  %v897_v15 = vpop.f32.mrf.mxu3 }
 0x45d   :  { %v887_v16 = vadd.f32 %v885_v5, %v881_v10  ;;  %v903_v20 = vadd.f32 %v901_v6, %v897_v15  ;;  %v852_v23 = vpop.f32.mrf.mxu0  ;;  %v866_v24 = vpop.f32.mrf.mxu1  ;;  %v1013_v5 = vstv %s1743_s5 }
 0x45f   :  { %1264 = vtanh.f32 %v887_v16  ;;  %v913_v25 = vmul.f32 0.5, %v903_v20 }
 0x460   :  { %v1261_v32 = vpop.eup %1260 }
 0x461   :  { %v1263_v14 = vpop.eup %1262  ;;  %v906_v33 = vmul.f32 0.5, %v1261_v32  ;;  %1266 = vtanh.f32 %v913_v25 }
 0x462   :  { %v910_v38 = vmul.f32 0.5, %v1263_v14 }
 0x463   :  { %v907_v21 = vadd.f32 0.5, %v906_v33 }
 0x464   :  { %v911_v40 = vadd.f32 0.5, %v910_v38  ;;  %v883_v41 = vpop.f32.mrf.mxu2  ;;  %v899_v42 = vpop.f32.mrf.mxu3 }
 0x465   :  { %v1265_v31 = vpop.eup %1264 }
 0x466   :  { %v917_v0 = vmul.f32 %v911_v40, %v835_v44  ;;  %v918_v50 = vmul.f32 %v1265_v31, %v907_v21 }
 0x467   :  { %v1267_v52 = vpop.eup %1266 }
 0x468   :  { %v919_v4 = vadd.f32 %v918_v50, %v917_v0  ;;  %v915_v8 = vmul.f32 0.5, %v1267_v52 }
 0x46a   :  { %1268 = vtanh.f32 %v919_v4  ;;  %v916_v9 = vadd.f32 0.5, %v915_v8 }
 0x470   :  { %v1269_v13 = vpop.eup %1268 }
 0x471   :  { %v921_v17 = vmul.f32 %v1269_v13, %v916_v9 }
 0x473   :  { %v924_v18 = vpack.c.bf16 %v921_v17, %v921_v17 }
 0x475   :  { %933 = vmatmul.bf16.vlgmr.msrb.gmra.mxu0 %v924_v18  ;;  %947 = vmatmul.bf16.vlgmr.msrb.gmra.mxu1 %v924_v18 }
 0x476   :  { %964 = vmatmul.bf16.vlgmr.msrb.gmra.mxu2 %v924_v18  ;;  %980 = vmatmul.bf16.vlgmr.msrb.gmra.mxu3 %v924_v18 }
 0x4f2   :  { %v934_v30 = vpop.f32.mrf.mxu0  ;;  %v948_v34 = vpop.f32.mrf.mxu1 }
 0x4f3   :  { %v938_v35 = vadd.f32 %v934_v30, %v923_v22  ;;  %v955_v39 = vadd.f32 %v953_v26, %v948_v34 }
 0x4f5   :  { %v988_v45 = vmul.f32 0.5, %v938_v35  ;;  %v992_v46 = vmul.f32 0.5, %v955_v39 }
 0x4f7   :  { %1270 = vtanh.f32 %v988_v45 }
 0x4f8   :  { %1272 = vtanh.f32 %v992_v46 }
 0x4f9   :  { %v965_v57 = vpop.f32.mrf.mxu2  ;;  %v981_v58 = vpop.f32.mrf.mxu3 }
 0x4fa   :  { %v971_v59 = vadd.f32 %v969_v47, %v965_v57  ;;  %v987_v63 = vadd.f32 %v985_v51, %v981_v58  ;;  %v936_v7 = vpop.f32.mrf.mxu0  ;;  %v950_v11 = vpop.f32.mrf.mxu1 }
 0x4fc   :  { %1274 = vtanh.f32 %v971_v59  ;;  %v997_v12 = vmul.f32 0.5, %v987_v63 }
 0x4fd   :  { %v1271_v19 = vpop.eup %1270 }
 0x4fe   :  { %v1273_v27 = vpop.eup %1272  ;;  %v990_v28 = vmul.f32 0.5, %v1271_v19  ;;  %1276 = vtanh.f32 %v997_v12 }
 0x4ff   :  { %v994_v29 = vmul.f32 0.5, %v1273_v27 }
 0x500   :  { %v991_v36 = vadd.f32 0.5, %v990_v28 }
 0x501   :  { %v995_v43 = vadd.f32 0.5, %v994_v29  ;;  %v967_v44 = vpop.f32.mrf.mxu2  ;;  %v983_v48 = vpop.f32.mrf.mxu3 }
 0x502   :  { %v1275_v49 = vpop.eup %1274 }
 0x503   :  { %v1001_v37 = vmul.f32 %v995_v43, %v919_v4  ;;  %v1002_v53 = vmul.f32 %v1275_v49, %v991_v36 }
 0x504   :  { %v1277_v54 = vpop.eup %1276 }
 0x505   :  { %v1003_v55 = vadd.f32 %v1002_v53, %v1001_v37  ;;  %v999_v56 = vmul.f32 0.5, %v1277_v54 }
 0x507   :  { %1278 = vtanh.f32 %v1003_v55  ;;  %v1000_v60 = vadd.f32 0.5, %v999_v56 }
 0x50d   :  { %v1279_v61 = vpop.eup %1278 }
 0x50e   :  { %v1005_v1 = vmul.f32 %v1279_v61, %v1000_v60 }
 0x510   :  { %v1007_v2 = vmul.f32 %v1006_v62, %v1005_v1 }
 0x512   :  { %v1009_v3 = vsel %vm1008_vm0, %v1007_v2, 0.0 }
 0x513   :  { %1010 = vadd.xlane.f32.xlu0 %v1009_v3 }
 0x586   :  { %v1011_v6 = vpop.xlane.xlu0 %1010 }
 0x587   :  { %v1014_v10 = vadd.f32 %v1013_v5, %v1011_v6 }
 0x589   :  { %1016 = vst.msk [vmem:[#allocation7] sm:$0x1] %vm1015_vm1, %v1014_v10 }
 0x58a   :  { %1027 = dma.vmem_to_hbm [thread:$0]  %s1023_s11, 16, %s1025_s14, [#allocation6]  }
 0x58b   :  { %1330 = dma.done.wait [#allocation6], 16  }
 0x58c   :  { %1331 = vsyncadd [#allocation6], 4294967280 }
 0x58d   :  { %1032 = vsyncpa [#allocation5], 1 }
 0x58e   :  { %1033 = vsyncpa [#allocation6], 1 }

</bundles_post_ra>
